<compile_context>
chip_gen: v7x
topology: tpu7x:2x2x1
jax: 0.10.0
libtpu: 0.0.40
codegen_flags: <defaults>
</compile_context>

<pallas_src>
import math
import functools

import jax
import jax.numpy as jnp
from jax import lax
from jax.experimental import pallas as pl
from jax.experimental.pallas import tpu as pltpu


def _round_up_to_multiple(n: int, m: int) -> int:
    return math.ceil(n / m) * m


# ----------------------------------------------------------------------------
# Pallas kernel: the whole decoder stack.  grid = (layer,).
# ----------------------------------------------------------------------------
def llama_stack_kernel(
    x_ref,        # (B, S, dim)              bf16   embedding (read at layer 0)
    wqkv_ref,     # (1, dim, H*Dh + 2*G*Dh)  bf16   fused q|k|v projection
    wo_ref,       # (1, H*Dh, dim)           bf16
    w13_ref,      # (1, dim, 2*dff)          bf16   fused SwiGLU w|v
    w2_ref,       # (1, dff, dim)            bf16
    g_attn_ref,   # (1, 1, dim)              bf16   RMSNorm gain (attention)
    g_ffn_ref,    # (1, 1, dim)              bf16   RMSNorm gain (ffn)
    cs_ref,       # (S, Dh)                  f32    [cos | sin] rotary table (shared)
    o_ref,        # (B, S, dim)              bf16
    act_ref,      # VMEM scratch (B*S, dim)  bf16   running activation (resident)
    *, n_heads, n_groups, head_dim, eps):

    layer = pl.program_id(0)
    n_layers = pl.num_programs(0)
    B, S, dim = x_ref.shape
    Dh = head_dim
    Dh2 = Dh // 2
    Dq = n_heads * Dh
    Dkv = n_groups * Dh
    G = n_groups
    rep = n_heads // n_groups
    dff = w2_ref.shape[1]
    scale = 1.0 / math.sqrt(Dh)

    # Seed the resident activation with the embedding at layer 0.
    @pl.when(layer == 0)
    def _():
        for b in range(B):
            act_ref[b * S:(b + 1) * S, :] = x_ref[b]

    x = act_ref[...]                                # (B*S, dim) bf16
    xf = x.astype(jnp.float32)

    # ---- RMSNorm (attention pre-norm); stats in f32 ----
    inv = lax.rsqrt(eps + jnp.mean(xf * xf, axis=-1, keepdims=True))
    xn = (xf * inv * g_attn_ref[0].astype(jnp.float32)).astype(x.dtype)

    # ---- fused QKV projection (single MXU contraction over dim, all batches) ----
    qkv = jnp.dot(xn, wqkv_ref[0],
                  preferred_element_type=jnp.float32).astype(x.dtype)
    q = qkv[:, :Dq]                                 # (B*S, H*Dh) bf16, rotate-half layout
    k = qkv[:, Dq:Dq + Dkv]                         # (B*S, G*Dh) bf16, rotate-half layout
    v = qkv[:, Dq + Dkv:]                           # (B*S, G*Dh) bf16

    # ---- hoisted attention constants (shared by every batch / group) ----
    cs = cs_ref[...]                                # (S, Dh) f32: [cos | sin]
    cos = cs[:, :Dh2]
    sin = cs[:, Dh2:]
    cos_q = jnp.tile(cos, (rep, 1))                 # (rep*S, Dh/2)
    sin_q = jnp.tile(sin, (rep, 1))
    rows = lax.broadcasted_iota(jnp.int32, (S, S), 0)
    cols = lax.broadcasted_iota(jnp.int32, (S, S), 1)
    mask = jnp.where(rows >= cols, 0.0, -1e30).astype(jnp.float32)   # additive, finite
    mask_q = jnp.tile(mask, (rep, 1))               # (rep*S, S)

    def rope(t, c, sn):                             # t: (N, Dh), layout [evens | odds]
        t = t.astype(jnp.float32)                   # rotation in f32 (as in torch)
        t1 = t[:, :Dh2]
        t2 = t[:, Dh2:]
        return jnp.concatenate([t1 * c - t2 * sn, t2 * c + t1 * sn], axis=1)

    # ---- grouped-query causal attention: one score / PV / wo-partial matmul per
    #      (batch, KV-group); wo projection accumulated in f32 (no attn scratch) ----
    for b in range(B):
        qb = q[b * S:(b + 1) * S, :]
        kb = k[b * S:(b + 1) * S, :]
        vb = v[b * S:(b + 1) * S, :]
        xb = x[b * S:(b + 1) * S, :]
        proj = jnp.zeros((S, dim), jnp.float32)
        for g in range(G):
            # Stack the `rep` query heads of this group along rows: (rep*S, Dh).
            qg = jnp.concatenate(
                [qb[:, (g * rep + r) * Dh:(g * rep + r + 1) * Dh] for r in range(rep)],
                axis=0)
            qg = (rope(qg, cos_q, sin_q) * scale).astype(x.dtype)   # scale folded into q
            kg = rope(kb[:, g * Dh:(g + 1) * Dh], cos, sin).astype(x.dtype)
            vg = vb[:, g * Dh:(g + 1) * Dh]

            sc = lax.dot_general(qg, kg, (((1,), (1,)), ((), ())),
                                 preferred_element_type=jnp.float32)   # (rep*S, S)
            sc = sc + mask_q
            sc = sc - jnp.max(sc, axis=-1, keepdims=True)
            p = jnp.exp(sc)
            denom = jnp.sum(p, axis=-1, keepdims=True)                 # (rep*S, 1)
            og = jnp.dot(p.astype(x.dtype), vg,
                         preferred_element_type=jnp.float32)           # (rep*S, Dh)
            og = (og / denom).astype(x.dtype)        # normalize on the small side

            # Reassemble to (S, rep*Dh) and accumulate the wo partial (K = rep*Dh).
            og2 = jnp.concatenate([og[r * S:(r + 1) * S, :] for r in range(rep)],
                                  axis=1)
            wo_g = wo_ref[0, g * rep * Dh:(g + 1) * rep * Dh, :]       # (rep*Dh, dim)
            proj = proj + jnp.dot(og2, wo_g, preferred_element_type=jnp.float32)

        act_ref[b * S:(b + 1) * S, :] = xb + proj.astype(x.dtype)      # residual 1

    h1 = act_ref[...]                                # (B*S, dim) bf16

    # ---- RMSNorm (ffn pre-norm) + fused SwiGLU ----
    h1f = h1.astype(jnp.float32)
    inv2 = lax.rsqrt(eps + jnp.mean(h1f * h1f, axis=-1, keepdims=True))
    hn = (h1f * inv2 * g_ffn_ref[0].astype(jnp.float32)).astype(x.dtype)
    ab = jnp.dot(hn, w13_ref[0], preferred_element_type=jnp.float32)   # (B*S, 2*dff)
    a = ab[:, :dff]
    bgate = ab[:, dff:]
    gated = (a * jax.nn.sigmoid(a) * bgate).astype(x.dtype)   # silu(w(x)) * v(x)
    ff = jnp.dot(gated, w2_ref[0], preferred_element_type=jnp.float32)

    out = h1 + ff.astype(x.dtype)                    # residual 2 (bf16)
    act_ref[...] = out

    # Write the HBM output once, after the last layer.
    @pl.when(layer == n_layers - 1)
    def _():
        for b in range(B):
            o_ref[b] = out[b * S:(b + 1) * S, :]


# ----------------------------------------------------------------------------
# Wrapper: one pallas_call for the whole stack.
# ----------------------------------------------------------------------------
def make_stack_fn(B, L, S, dim, n_heads, n_groups, head_dim, dim_ff, eps):
    Dq = n_heads * head_dim
    Dkv = n_groups * head_dim
    kernel = functools.partial(llama_stack_kernel, n_heads=n_heads,
                               n_groups=n_groups, head_dim=head_dim, eps=eps)

    in_specs = [
        pl.BlockSpec((B, S, dim),            lambda l: (0, 0, 0)),   # embedding (1 DMA)
        pl.BlockSpec((1, dim, Dq + 2 * Dkv), lambda l: (l, 0, 0)),   # wqkv
        pl.BlockSpec((1, Dq, dim),           lambda l: (l, 0, 0)),   # wo
        pl.BlockSpec((1, dim, 2 * dim_ff),   lambda l: (l, 0, 0)),   # w13 (SwiGLU)
        pl.BlockSpec((1, dim_ff, dim),       lambda l: (l, 0, 0)),   # w2  (SwiGLU)
        pl.BlockSpec((1, 1, dim),            lambda l: (l, 0, 0)),   # gain (attn)
        pl.BlockSpec((1, 1, dim),            lambda l: (l, 0, 0)),   # gain (ffn)
        pl.BlockSpec((S, head_dim),          lambda l: (0, 0)),      # [cos|sin] table
    ]

    # VMEM budget derived from actual block sizes: double-buffered per-layer
    # weights + embedding/output blocks + resident activation scratch, with 4x
    # headroom for temporaries, clamped to [32 MiB, 64 MiB] (v7x physical).
    bf = 2
    per_layer_w = (dim * (Dq + 2 * Dkv) + Dq * dim +
                   dim * 2 * dim_ff + dim_ff * dim + 2 * dim) * bf
    act_bytes = 3 * B * S * dim * bf + S * head_dim * 4
    vmem_limit = max(32 * 1024 * 1024,
                     min(64 * 1024 * 1024, 4 * (2 * per_layer_w + act_bytes)))

    return pl.pallas_call(
        kernel,
        out_shape=jax.ShapeDtypeStruct((B, S, dim), jnp.bfloat16),
        grid_spec=pltpu.PrefetchScalarGridSpec(
            num_scalar_prefetch=0,
            grid=(L,),                         # layer axis only: weights stream once
            in_specs=in_specs,
            out_specs=pl.BlockSpec((B, S, dim), lambda l: (0, 0, 0)),
            scratch_shapes=[
                pltpu.VMEM((B * S, dim), jnp.bfloat16),   # running activation
            ],
        ),
        compiler_params=pltpu.CompilerParams(
            dimension_semantics=("arbitrary",),
            vmem_limit_bytes=vmem_limit,
        ),
    )


# ----------------------------------------------------------------------------
# Parameter / table construction (plain JAX glue).
# ----------------------------------------------------------------------------
def rope_cs_table(head_dim, S, cur_pos, theta=10000.0):
    # cos/sin of RotaryEmbeddings.compute_angles, packed lane-dense as a single
    # (S, head_dim) table [cos | sin]; shared by every head/group/layer.
    freqs = theta ** (-jnp.arange(0, head_dim, 2, dtype=jnp.float32) / head_dim)
    pos = jnp.arange(cur_pos, cur_pos + S, dtype=jnp.float32)
    ang = pos[:, None] * freqs[None, :]
    return jnp.concatenate([jnp.cos(ang), jnp.sin(ang)], axis=1)


def _half_layout_perm(n, head_dim):
    # Column permutation turning the interleaved RoPE pair layout [e0,o0,e1,o1,...]
    # (per head) into the rotate-half layout [e0,e1,...,o0,o1,...].  q.k^T is
    # invariant to applying the same permutation to both q and k head dims, so the
    # layer output matches the interleaved torch formulation exactly.
    idx = []
    for h in range(n):
        base = h * head_dim
        idx += [base + 2 * i for i in range(head_dim // 2)]
        idx += [base + 2 * i + 1 for i in range(head_dim // 2)]
    return jnp.asarray(idx, dtype=jnp.int32)


def init_layer_params(key, dim, n_heads, n_groups, head_dim, dim_ff):
    ks = jax.random.split(key, 7)
    scale = 0.05
    bf = jnp.bfloat16
    return dict(
        wq=(scale * jax.random.normal(ks[0], (dim, n_heads * head_dim))).astype(bf),
        wk=(scale * jax.random.normal(ks[1], (dim, n_groups * head_dim))).astype(bf),
        wv=(scale * jax.random.normal(ks[2], (dim, n_groups * head_dim))).astype(bf),
        wo=(scale * jax.random.normal(ks[3], (n_heads * head_dim, dim))).astype(bf),
        g_attn=jnp.ones((dim,), dtype=bf),
        g_ffn=jnp.ones((dim,), dtype=bf),
        w=(scale * jax.random.normal(ks[4], (dim, dim_ff))).astype(bf),
        v=(scale * jax.random.normal(ks[5], (dim, dim_ff))).astype(bf),
        w2=(scale * jax.random.normal(ks[6], (dim_ff, dim))).astype(bf),
    )


def stack_layer_params(layer_params, n_heads, n_groups, head_dim):
    perm_q = _half_layout_perm(n_heads, head_dim)
    perm_k = _half_layout_perm(n_groups, head_dim)
    wqkv = jnp.stack([jnp.concatenate(
        [p["wq"][:, perm_q], p["wk"][:, perm_k], p["wv"]], axis=1)
        for p in layer_params])
    wo = jnp.stack([p["wo"] for p in layer_params])
    w13 = jnp.stack([jnp.concatenate([p["w"], p["v"]], axis=1) for p in layer_params])
    w2 = jnp.stack([p["w2"] for p in layer_params])
    g_attn = jnp.stack([p["g_attn"].reshape(1, -1) for p in layer_params])
    g_ffn = jnp.stack([p["g_ffn"].reshape(1, -1) for p in layer_params])
    return wqkv, wo, w13, w2, g_attn, g_ffn


def llama_decoder_stack(embedding, layer_params, *, n_heads, n_groups,
                        eps, cur_pos=0):
    B, S, dim = embedding.shape
    head_dim = dim // n_heads
    dim_ff = layer_params[0]["w"].shape[1]
    L = len(layer_params)

    cs = rope_cs_table(head_dim, S, cur_pos)
    wqkv, wo, w13, w2, g_attn, g_ffn = stack_layer_params(
        layer_params, n_heads, n_groups, head_dim)

    fn = make_stack_fn(B, L, S, dim, n_heads, n_groups, head_dim, dim_ff, eps)
    return fn(embedding, wqkv, wo, w13, w2, g_attn, g_ffn, cs)


# ----------------------------------------------------------------------------
if __name__ == "__main__":
    # LlamaArgs(dim=32, n_layers=2, n_heads=4, multiple_of=16, norm_eps=1e-6,
    #           max_ctx_len=64, max_batch_size=2, n_groups=2)
    dim, n_layers, n_heads, n_groups = 32, 2, 4, 2
    multiple_of, eps = 16, 1e-6
    B, S = 2, 8
    head_dim = dim // n_heads
    dim_ff = _round_up_to_multiple(4 * int(2 * dim / 3), multiple_of)   # 96

    key = jax.random.PRNGKey(0)
    k_x, k_p = jax.random.split(key)
    embedding = jax.random.normal(k_x, (B, S, dim)).astype(jnp.bfloat16)

    layer_keys = jax.random.split(k_p, n_layers)
    layer_params = [init_layer_params(k, dim, n_heads, n_groups, head_dim, dim_ff)
                    for k in layer_keys]

    out = llama_decoder_stack(embedding, layer_params,
                              n_heads=n_heads, n_groups=n_groups,
                              eps=eps, cur_pos=0)
    out = jax.block_until_ready(out)
    assert out.shape == (B, S, dim) and out.dtype == jnp.bfloat16
    assert bool(jnp.all(jnp.isfinite(out.astype(jnp.float32))))
    print("KERNEL_OK")
</pallas_src>

<mosaic_0001>
module attributes {stable_mosaic.version = 11 : i64} {
  func.func @llama_stack_kernel(%arg0: i32, %arg1: memref<2x8x32xbf16, #tpu.memory_space<vmem>>, %arg2: memref<1x32x64xbf16, #tpu.memory_space<vmem>>, %arg3: memref<1x32x32xbf16, #tpu.memory_space<vmem>>, %arg4: memref<1x32x192xbf16, #tpu.memory_space<vmem>>, %arg5: memref<1x96x32xbf16, #tpu.memory_space<vmem>>, %arg6: memref<1x1x32xbf16, #tpu.memory_space<vmem>>, %arg7: memref<1x1x32xbf16, #tpu.memory_space<vmem>>, %arg8: memref<8x8xf32, #tpu.memory_space<vmem>>, %arg9: memref<2x8x32xbf16, #tpu.memory_space<vmem>>, %arg10: memref<16x32xbf16, #tpu.memory_space<vmem>>) attributes {dimension_semantics = [#tpu.dimension_semantics<arbitrary>], iteration_bounds = array<i64: 2>, scalar_prefetch = 0 : i64, scratch_operands = 1 : i64, tpu.core_type = #tpu.core_type<tc>, window_params = [{pipeline_mode = #tpu.pipeline_mode<synchronous>, transform_indices = @transform_0, window_bounds = array<i64: 2, 8, 32>}, {transform_indices = @transform_1, window_bounds = array<i64: 1, 32, 64>}, {transform_indices = @transform_2, window_bounds = array<i64: 1, 32, 32>}, {transform_indices = @transform_3, window_bounds = array<i64: 1, 32, 192>}, {transform_indices = @transform_4, window_bounds = array<i64: 1, 96, 32>}, {transform_indices = @transform_5, window_bounds = array<i64: 1, 1, 32>}, {transform_indices = @transform_6, window_bounds = array<i64: 1, 1, 32>}, {pipeline_mode = #tpu.pipeline_mode<synchronous>, transform_indices = @transform_7, window_bounds = array<i64: 8, 8>}, {pipeline_mode = #tpu.pipeline_mode<synchronous>, transform_indices = @transform_8, window_bounds = array<i64: 2, 8, 32>}]} {
    %c0_i32 = arith.constant 0 : i32
    %0 = arith.cmpi eq, %arg0, %c0_i32 : i32
    %1 = arith.extui %0 : i1 to i32
    %c0_i32_0 = arith.constant 0 : i32
    %2 = arith.cmpi ne, %1, %c0_i32_0 : i32
    scf.if %2 {
      %c0_75 = arith.constant 0 : index
      %c0_76 = arith.constant 0 : index
      %c0_77 = arith.constant 0 : index
      %296 = vector.load %arg1[%c0_75, %c0_76, %c0_77] : memref<2x8x32xbf16, #tpu.memory_space<vmem>>, vector<1x8x32xbf16>
      %297 = vector.shape_cast %296 : vector<1x8x32xbf16> to vector<8x32xbf16>
      %c0_78 = arith.constant 0 : index
      %c0_79 = arith.constant 0 : index
      %298 = vector.load %arg10[%c0_78, %c0_79] : memref<16x32xbf16, #tpu.memory_space<vmem>>, vector<8x32xbf16>
      tpu.vector_store %arg10[%c0_78, %c0_79], %297 {strides = array<i32>} : memref<16x32xbf16, #tpu.memory_space<vmem>>, vector<8x32xbf16>,
      %c1 = arith.constant 1 : index
      %c0_80 = arith.constant 0 : index
      %c0_81 = arith.constant 0 : index
      %299 = vector.load %arg1[%c1, %c0_80, %c0_81] : memref<2x8x32xbf16, #tpu.memory_space<vmem>>, vector<1x8x32xbf16>
      %300 = vector.shape_cast %299 : vector<1x8x32xbf16> to vector<8x32xbf16>
      %c8_82 = arith.constant 8 : index
      %c0_83 = arith.constant 0 : index
      %301 = vector.load %arg10[%c8_82, %c0_83] : memref<16x32xbf16, #tpu.memory_space<vmem>>, vector<8x32xbf16>
      tpu.vector_store %arg10[%c8_82, %c0_83], %300 {strides = array<i32>} : memref<16x32xbf16, #tpu.memory_space<vmem>>, vector<8x32xbf16>,
    } else {
    }
    %c0 = arith.constant 0 : index
    %c0_1 = arith.constant 0 : index
    %3 = vector.load %arg10[%c0, %c0_1] : memref<16x32xbf16, #tpu.memory_space<vmem>>, vector<16x32xbf16>
    %4 = arith.extf %3 : vector<16x32xbf16> to vector<16x32xf32>
    %5 = arith.mulf %4, %4 : vector<16x32xf32>
    %cst = arith.constant dense<0.000000e+00> : vector<16xf32>
    %6 = vector.multi_reduction <add>, %5, %cst [1] : vector<16x32xf32> to vector<16xf32>
    %7 = vector.shape_cast %6 : vector<16xf32> to vector<16x1xf32>
    %cst_2 = arith.constant 3.200000e+01 : f32
    %8 = vector.broadcast %cst_2 : f32 to vector<16x1xf32>
    %9 = arith.divf %7, %8 : vector<16x1xf32>
    %cst_3 = arith.constant 9.99999997E-7 : f32
    %10 = vector.broadcast %cst_3 : f32 to vector<16x1xf32>
    %11 = arith.addf %10, %9 : vector<16x1xf32>
    %12 = math.rsqrt %11 : vector<16x1xf32>
    %13 = vector.broadcast %12 : vector<16x1xf32> to vector<16x32xf32>
    %14 = arith.mulf %4, %13 : vector<16x32xf32>
    %c0_4 = arith.constant 0 : index
    %c0_5 = arith.constant 0 : index
    %c0_6 = arith.constant 0 : index
    %15 = vector.load %arg6[%c0_4, %c0_5, %c0_6] : memref<1x1x32xbf16, #tpu.memory_space<vmem>>, vector<1x1x32xbf16>
    %16 = vector.shape_cast %15 : vector<1x1x32xbf16> to vector<1x32xbf16>
    %17 = arith.extf %16 : vector<1x32xbf16> to vector<1x32xf32>
    %18 = vector.broadcast %17 : vector<1x32xf32> to vector<16x32xf32>
    %19 = arith.mulf %14, %18 : vector<16x32xf32>
    %20 = arith.truncf %19 : vector<16x32xf32> to vector<16x32xbf16>
    %c0_7 = arith.constant 0 : index
    %c0_8 = arith.constant 0 : index
    %c0_9 = arith.constant 0 : index
    %21 = vector.load %arg2[%c0_7, %c0_8, %c0_9] : memref<1x32x64xbf16, #tpu.memory_space<vmem>>, vector<1x32x64xbf16>
    %22 = vector.shape_cast %21 : vector<1x32x64xbf16> to vector<32x64xbf16>
    %cst_10 = arith.constant dense<0.000000e+00> : vector<16x64xf32>
    %23 = tpu.matmul %20, %22, %cst_10 {dimension_numbers = #tpu.dot_dimension_numbers<[1], [0], [0], [1], [0, 0, 1, 1], [], []>} : vector<16x32xbf16>, vector<32x64xbf16>, vector<16x64xf32> -> vector<16x64xf32>
    %24 = arith.truncf %23 : vector<16x64xf32> to vector<16x64xbf16>
    %25 = vector.extract_strided_slice %24 {offsets = [0, 0], sizes = [16, 32], strides = [1, 1]} : vector<16x64xbf16> to vector<16x32xbf16>
    %26 = vector.extract_strided_slice %24 {offsets = [0, 32], sizes = [16, 16], strides = [1, 1]} : vector<16x64xbf16> to vector<16x16xbf16>
    %27 = vector.extract_strided_slice %24 {offsets = [0, 48], sizes = [16, 16], strides = [1, 1]} : vector<16x64xbf16> to vector<16x16xbf16>
    %c0_11 = arith.constant 0 : index
    %c0_12 = arith.constant 0 : index
    %28 = vector.load %arg8[%c0_11, %c0_12] : memref<8x8xf32, #tpu.memory_space<vmem>>, vector<8x8xf32>
    %29 = vector.extract_strided_slice %28 {offsets = [0, 0], sizes = [8, 4], strides = [1, 1]} : vector<8x8xf32> to vector<8x4xf32>
    %30 = vector.extract_strided_slice %28 {offsets = [0, 4], sizes = [8, 4], strides = [1, 1]} : vector<8x8xf32> to vector<8x4xf32>
    %31 = tpu.concatenate %29, %29 in 0 : vector<8x4xf32>, vector<8x4xf32> -> vector<16x4xf32>
    %32 = tpu.concatenate %30, %30 in 0 : vector<8x4xf32>, vector<8x4xf32> -> vector<16x4xf32>
    %33 = tpu.iota {dimensions = array<i32: 0>} : vector<8x8xi32>
    %34 = tpu.iota {dimensions = array<i32: 1>} : vector<8x8xi32>
    %35 = arith.cmpi sge, %33, %34 : vector<8x8xi32>
    %cst_13 = arith.constant 0.000000e+00 : f32
    %cst_14 = arith.constant -1.000000e+30 : f32
    %36 = vector.broadcast %cst_13 : f32 to vector<8x8xf32>
    %37 = vector.broadcast %cst_14 : f32 to vector<8x8xf32>
    %38 = arith.select %35, %36, %37 : vector<8x8xi1>, vector<8x8xf32>
    %39 = tpu.concatenate %38, %38 in 0 : vector<8x8xf32>, vector<8x8xf32> -> vector<16x8xf32>
    %40 = vector.extract_strided_slice %25 {offsets = [0, 0], sizes = [8, 32], strides = [1, 1]} : vector<16x32xbf16> to vector<8x32xbf16>
    %41 = vector.extract_strided_slice %26 {offsets = [0, 0], sizes = [8, 16], strides = [1, 1]} : vector<16x16xbf16> to vector<8x16xbf16>
    %42 = vector.extract_strided_slice %27 {offsets = [0, 0], sizes = [8, 16], strides = [1, 1]} : vector<16x16xbf16> to vector<8x16xbf16>
    %43 = vector.extract_strided_slice %3 {offsets = [0, 0], sizes = [8, 32], strides = [1, 1]} : vector<16x32xbf16> to vector<8x32xbf16>
    %cst_15 = arith.constant 0.000000e+00 : f32
    %44 = vector.broadcast %cst_15 : f32 to vector<8x32xf32>
    %45 = vector.extract_strided_slice %40 {offsets = [0, 0], sizes = [8, 8], strides = [1, 1]} : vector<8x32xbf16> to vector<8x8xbf16>
    %46 = vector.extract_strided_slice %40 {offsets = [0, 8], sizes = [8, 8], strides = [1, 1]} : vector<8x32xbf16> to vector<8x8xbf16>
    %47 = tpu.concatenate %45, %46 in 0 : vector<8x8xbf16>, vector<8x8xbf16> -> vector<16x8xbf16>
    %48 = arith.extf %47 : vector<16x8xbf16> to vector<16x8xf32>
    %49 = vector.extract_strided_slice %48 {offsets = [0, 0], sizes = [16, 4], strides = [1, 1]} : vector<16x8xf32> to vector<16x4xf32>
    %50 = vector.extract_strided_slice %48 {offsets = [0, 4], sizes = [16, 4], strides = [1, 1]} : vector<16x8xf32> to vector<16x4xf32>
    %51 = arith.mulf %49, %31 : vector<16x4xf32>
    %52 = arith.mulf %50, %32 : vector<16x4xf32>
    %53 = arith.subf %51, %52 : vector<16x4xf32>
    %54 = arith.mulf %50, %31 : vector<16x4xf32>
    %55 = arith.mulf %49, %32 : vector<16x4xf32>
    %56 = arith.addf %54, %55 : vector<16x4xf32>
    %57 = tpu.concatenate %53, %56 in 1 : vector<16x4xf32>, vector<16x4xf32> -> vector<16x8xf32>
    %cst_16 = arith.constant 0.353553385 : f32
    %58 = vector.broadcast %cst_16 : f32 to vector<16x8xf32>
    %59 = arith.mulf %57, %58 : vector<16x8xf32>
    %60 = arith.truncf %59 : vector<16x8xf32> to vector<16x8xbf16>
    %61 = vector.extract_strided_slice %41 {offsets = [0, 0], sizes = [8, 8], strides = [1, 1]} : vector<8x16xbf16> to vector<8x8xbf16>
    %62 = arith.extf %61 : vector<8x8xbf16> to vector<8x8xf32>
    %63 = vector.extract_strided_slice %62 {offsets = [0, 0], sizes = [8, 4], strides = [1, 1]} : vector<8x8xf32> to vector<8x4xf32>
    %64 = vector.extract_strided_slice %62 {offsets = [0, 4], sizes = [8, 4], strides = [1, 1]} : vector<8x8xf32> to vector<8x4xf32>
    %65 = arith.mulf %63, %29 : vector<8x4xf32>
    %66 = arith.mulf %64, %30 : vector<8x4xf32>
    %67 = arith.subf %65, %66 : vector<8x4xf32>
    %68 = arith.mulf %64, %29 : vector<8x4xf32>
    %69 = arith.mulf %63, %30 : vector<8x4xf32>
    %70 = arith.addf %68, %69 : vector<8x4xf32>
    %71 = tpu.concatenate %67, %70 in 1 : vector<8x4xf32>, vector<8x4xf32> -> vector<8x8xf32>
    %72 = arith.truncf %71 : vector<8x8xf32> to vector<8x8xbf16>
    %73 = vector.extract_strided_slice %42 {offsets = [0, 0], sizes = [8, 8], strides = [1, 1]} : vector<8x16xbf16> to vector<8x8xbf16>
    %cst_17 = arith.constant dense<0.000000e+00> : vector<16x8xf32>
    %74 = tpu.matmul %60, %72, %cst_17 {dimension_numbers = #tpu.dot_dimension_numbers<[1], [1], [0], [0], [0, 0, 1, 0], [], []>} : vector<16x8xbf16>, vector<8x8xbf16>, vector<16x8xf32> -> vector<16x8xf32>
    %75 = arith.addf %74, %39 : vector<16x8xf32>
    %cst_18 = arith.constant dense<0xFF800000> : vector<16xf32>
    %76 = vector.multi_reduction <maximumf>, %75, %cst_18 [1] : vector<16x8xf32> to vector<16xf32>
    %77 = vector.shape_cast %76 : vector<16xf32> to vector<16x1xf32>
    %78 = vector.broadcast %77 : vector<16x1xf32> to vector<16x8xf32>
    %79 = arith.subf %75, %78 : vector<16x8xf32>
    %80 = math.exp %79 : vector<16x8xf32>
    %cst_19 = arith.constant dense<0.000000e+00> : vector<16xf32>
    %81 = vector.multi_reduction <add>, %80, %cst_19 [1] : vector<16x8xf32> to vector<16xf32>
    %82 = vector.shape_cast %81 : vector<16xf32> to vector<16x1xf32>
    %83 = arith.truncf %80 : vector<16x8xf32> to vector<16x8xbf16>
    %cst_20 = arith.constant dense<0.000000e+00> : vector<16x8xf32>
    %84 = tpu.matmul %83, %73, %cst_20 {dimension_numbers = #tpu.dot_dimension_numbers<[1], [0], [0], [1], [0, 0, 1, 1], [], []>} : vector<16x8xbf16>, vector<8x8xbf16>, vector<16x8xf32> -> vector<16x8xf32>
    %85 = vector.broadcast %82 : vector<16x1xf32> to vector<16x8xf32>
    %86 = arith.divf %84, %85 : vector<16x8xf32>
    %87 = arith.truncf %86 : vector<16x8xf32> to vector<16x8xbf16>
    %88 = vector.extract_strided_slice %87 {offsets = [0, 0], sizes = [8, 8], strides = [1, 1]} : vector<16x8xbf16> to vector<8x8xbf16>
    %89 = vector.extract_strided_slice %87 {offsets = [8, 0], sizes = [8, 8], strides = [1, 1]} : vector<16x8xbf16> to vector<8x8xbf16>
    %90 = tpu.concatenate %88, %89 in 1 : vector<8x8xbf16>, vector<8x8xbf16> -> vector<8x16xbf16>
    %c0_21 = arith.constant 0 : index
    %c0_22 = arith.constant 0 : index
    %c0_23 = arith.constant 0 : index
    %91 = vector.load %arg3[%c0_21, %c0_22, %c0_23] : memref<1x32x32xbf16, #tpu.memory_space<vmem>>, vector<1x16x32xbf16>
    %92 = vector.shape_cast %91 : vector<1x16x32xbf16> to vector<16x32xbf16>
    %cst_24 = arith.constant dense<0.000000e+00> : vector<8x32xf32>
    %93 = tpu.matmul %90, %92, %cst_24 {dimension_numbers = #tpu.dot_dimension_numbers<[1], [0], [0], [1], [0, 0, 1, 1], [], []>} : vector<8x16xbf16>, vector<16x32xbf16>, vector<8x32xf32> -> vector<8x32xf32>
    %94 = arith.addf %44, %93 : vector<8x32xf32>
    %95 = vector.extract_strided_slice %40 {offsets = [0, 16], sizes = [8, 8], strides = [1, 1]} : vector<8x32xbf16> to vector<8x8xbf16>
    %96 = vector.extract_strided_slice %40 {offsets = [0, 24], sizes = [8, 8], strides = [1, 1]} : vector<8x32xbf16> to vector<8x8xbf16>
    %97 = tpu.concatenate %95, %96 in 0 : vector<8x8xbf16>, vector<8x8xbf16> -> vector<16x8xbf16>
    %98 = arith.extf %97 : vector<16x8xbf16> to vector<16x8xf32>
    %99 = vector.extract_strided_slice %98 {offsets = [0, 0], sizes = [16, 4], strides = [1, 1]} : vector<16x8xf32> to vector<16x4xf32>
    %100 = vector.extract_strided_slice %98 {offsets = [0, 4], sizes = [16, 4], strides = [1, 1]} : vector<16x8xf32> to vector<16x4xf32>
    %101 = arith.mulf %99, %31 : vector<16x4xf32>
    %102 = arith.mulf %100, %32 : vector<16x4xf32>
    %103 = arith.subf %101, %102 : vector<16x4xf32>
    %104 = arith.mulf %100, %31 : vector<16x4xf32>
    %105 = arith.mulf %99, %32 : vector<16x4xf32>
    %106 = arith.addf %104, %105 : vector<16x4xf32>
    %107 = tpu.concatenate %103, %106 in 1 : vector<16x4xf32>, vector<16x4xf32> -> vector<16x8xf32>
    %cst_25 = arith.constant 0.353553385 : f32
    %108 = vector.broadcast %cst_25 : f32 to vector<16x8xf32>
    %109 = arith.mulf %107, %108 : vector<16x8xf32>
    %110 = arith.truncf %109 : vector<16x8xf32> to vector<16x8xbf16>
    %111 = vector.extract_strided_slice %41 {offsets = [0, 8], sizes = [8, 8], strides = [1, 1]} : vector<8x16xbf16> to vector<8x8xbf16>
    %112 = arith.extf %111 : vector<8x8xbf16> to vector<8x8xf32>
    %113 = vector.extract_strided_slice %112 {offsets = [0, 0], sizes = [8, 4], strides = [1, 1]} : vector<8x8xf32> to vector<8x4xf32>
    %114 = vector.extract_strided_slice %112 {offsets = [0, 4], sizes = [8, 4], strides = [1, 1]} : vector<8x8xf32> to vector<8x4xf32>
    %115 = arith.mulf %113, %29 : vector<8x4xf32>
    %116 = arith.mulf %114, %30 : vector<8x4xf32>
    %117 = arith.subf %115, %116 : vector<8x4xf32>
    %118 = arith.mulf %114, %29 : vector<8x4xf32>
    %119 = arith.mulf %113, %30 : vector<8x4xf32>
    %120 = arith.addf %118, %119 : vector<8x4xf32>
    %121 = tpu.concatenate %117, %120 in 1 : vector<8x4xf32>, vector<8x4xf32> -> vector<8x8xf32>
    %122 = arith.truncf %121 : vector<8x8xf32> to vector<8x8xbf16>
    %123 = vector.extract_strided_slice %42 {offsets = [0, 8], sizes = [8, 8], strides = [1, 1]} : vector<8x16xbf16> to vector<8x8xbf16>
    %cst_26 = arith.constant dense<0.000000e+00> : vector<16x8xf32>
    %124 = tpu.matmul %110, %122, %cst_26 {dimension_numbers = #tpu.dot_dimension_numbers<[1], [1], [0], [0], [0, 0, 1, 0], [], []>} : vector<16x8xbf16>, vector<8x8xbf16>, vector<16x8xf32> -> vector<16x8xf32>
    %125 = arith.addf %124, %39 : vector<16x8xf32>
    %cst_27 = arith.constant dense<0xFF800000> : vector<16xf32>
    %126 = vector.multi_reduction <maximumf>, %125, %cst_27 [1] : vector<16x8xf32> to vector<16xf32>
    %127 = vector.shape_cast %126 : vector<16xf32> to vector<16x1xf32>
    %128 = vector.broadcast %127 : vector<16x1xf32> to vector<16x8xf32>
    %129 = arith.subf %125, %128 : vector<16x8xf32>
    %130 = math.exp %129 : vector<16x8xf32>
    %cst_28 = arith.constant dense<0.000000e+00> : vector<16xf32>
    %131 = vector.multi_reduction <add>, %130, %cst_28 [1] : vector<16x8xf32> to vector<16xf32>
    %132 = vector.shape_cast %131 : vector<16xf32> to vector<16x1xf32>
    %133 = arith.truncf %130 : vector<16x8xf32> to vector<16x8xbf16>
    %cst_29 = arith.constant dense<0.000000e+00> : vector<16x8xf32>
    %134 = tpu.matmul %133, %123, %cst_29 {dimension_numbers = #tpu.dot_dimension_numbers<[1], [0], [0], [1], [0, 0, 1, 1], [], []>} : vector<16x8xbf16>, vector<8x8xbf16>, vector<16x8xf32> -> vector<16x8xf32>
    %135 = vector.broadcast %132 : vector<16x1xf32> to vector<16x8xf32>
    %136 = arith.divf %134, %135 : vector<16x8xf32>
    %137 = arith.truncf %136 : vector<16x8xf32> to vector<16x8xbf16>
    %138 = vector.extract_strided_slice %137 {offsets = [0, 0], sizes = [8, 8], strides = [1, 1]} : vector<16x8xbf16> to vector<8x8xbf16>
    %139 = vector.extract_strided_slice %137 {offsets = [8, 0], sizes = [8, 8], strides = [1, 1]} : vector<16x8xbf16> to vector<8x8xbf16>
    %140 = tpu.concatenate %138, %139 in 1 : vector<8x8xbf16>, vector<8x8xbf16> -> vector<8x16xbf16>
    %c0_30 = arith.constant 0 : index
    %c16 = arith.constant 16 : index
    %c0_31 = arith.constant 0 : index
    %141 = vector.load %arg3[%c0_30, %c16, %c0_31] : memref<1x32x32xbf16, #tpu.memory_space<vmem>>, vector<1x16x32xbf16>
    %142 = vector.shape_cast %141 : vector<1x16x32xbf16> to vector<16x32xbf16>
    %cst_32 = arith.constant dense<0.000000e+00> : vector<8x32xf32>
    %143 = tpu.matmul %140, %142, %cst_32 {dimension_numbers = #tpu.dot_dimension_numbers<[1], [0], [0], [1], [0, 0, 1, 1], [], []>} : vector<8x16xbf16>, vector<16x32xbf16>, vector<8x32xf32> -> vector<8x32xf32>
    %144 = arith.addf %94, %143 : vector<8x32xf32>
    %145 = arith.truncf %144 : vector<8x32xf32> to vector<8x32xbf16>
    %146 = arith.addf %43, %145 : vector<8x32xbf16>
    %c0_33 = arith.constant 0 : index
    %c0_34 = arith.constant 0 : index
    %147 = vector.load %arg10[%c0_33, %c0_34] : memref<16x32xbf16, #tpu.memory_space<vmem>>, vector<8x32xbf16>
    tpu.vector_store %arg10[%c0_33, %c0_34], %146 {strides = array<i32>} : memref<16x32xbf16, #tpu.memory_space<vmem>>, vector<8x32xbf16>,
    %148 = vector.extract_strided_slice %25 {offsets = [8, 0], sizes = [8, 32], strides = [1, 1]} : vector<16x32xbf16> to vector<8x32xbf16>
    %149 = vector.extract_strided_slice %26 {offsets = [8, 0], sizes = [8, 16], strides = [1, 1]} : vector<16x16xbf16> to vector<8x16xbf16>
    %150 = vector.extract_strided_slice %27 {offsets = [8, 0], sizes = [8, 16], strides = [1, 1]} : vector<16x16xbf16> to vector<8x16xbf16>
    %151 = vector.extract_strided_slice %3 {offsets = [8, 0], sizes = [8, 32], strides = [1, 1]} : vector<16x32xbf16> to vector<8x32xbf16>
    %cst_35 = arith.constant 0.000000e+00 : f32
    %152 = vector.broadcast %cst_35 : f32 to vector<8x32xf32>
    %153 = vector.extract_strided_slice %148 {offsets = [0, 0], sizes = [8, 8], strides = [1, 1]} : vector<8x32xbf16> to vector<8x8xbf16>
    %154 = vector.extract_strided_slice %148 {offsets = [0, 8], sizes = [8, 8], strides = [1, 1]} : vector<8x32xbf16> to vector<8x8xbf16>
    %155 = tpu.concatenate %153, %154 in 0 : vector<8x8xbf16>, vector<8x8xbf16> -> vector<16x8xbf16>
    %156 = arith.extf %155 : vector<16x8xbf16> to vector<16x8xf32>
    %157 = vector.extract_strided_slice %156 {offsets = [0, 0], sizes = [16, 4], strides = [1, 1]} : vector<16x8xf32> to vector<16x4xf32>
    %158 = vector.extract_strided_slice %156 {offsets = [0, 4], sizes = [16, 4], strides = [1, 1]} : vector<16x8xf32> to vector<16x4xf32>
    %159 = arith.mulf %157, %31 : vector<16x4xf32>
    %160 = arith.mulf %158, %32 : vector<16x4xf32>
    %161 = arith.subf %159, %160 : vector<16x4xf32>
    %162 = arith.mulf %158, %31 : vector<16x4xf32>
    %163 = arith.mulf %157, %32 : vector<16x4xf32>
    %164 = arith.addf %162, %163 : vector<16x4xf32>
    %165 = tpu.concatenate %161, %164 in 1 : vector<16x4xf32>, vector<16x4xf32> -> vector<16x8xf32>
    %cst_36 = arith.constant 0.353553385 : f32
    %166 = vector.broadcast %cst_36 : f32 to vector<16x8xf32>
    %167 = arith.mulf %165, %166 : vector<16x8xf32>
    %168 = arith.truncf %167 : vector<16x8xf32> to vector<16x8xbf16>
    %169 = vector.extract_strided_slice %149 {offsets = [0, 0], sizes = [8, 8], strides = [1, 1]} : vector<8x16xbf16> to vector<8x8xbf16>
    %170 = arith.extf %169 : vector<8x8xbf16> to vector<8x8xf32>
    %171 = vector.extract_strided_slice %170 {offsets = [0, 0], sizes = [8, 4], strides = [1, 1]} : vector<8x8xf32> to vector<8x4xf32>
    %172 = vector.extract_strided_slice %170 {offsets = [0, 4], sizes = [8, 4], strides = [1, 1]} : vector<8x8xf32> to vector<8x4xf32>
    %173 = arith.mulf %171, %29 : vector<8x4xf32>
    %174 = arith.mulf %172, %30 : vector<8x4xf32>
    %175 = arith.subf %173, %174 : vector<8x4xf32>
    %176 = arith.mulf %172, %29 : vector<8x4xf32>
    %177 = arith.mulf %171, %30 : vector<8x4xf32>
    %178 = arith.addf %176, %177 : vector<8x4xf32>
    %179 = tpu.concatenate %175, %178 in 1 : vector<8x4xf32>, vector<8x4xf32> -> vector<8x8xf32>
    %180 = arith.truncf %179 : vector<8x8xf32> to vector<8x8xbf16>
    %181 = vector.extract_strided_slice %150 {offsets = [0, 0], sizes = [8, 8], strides = [1, 1]} : vector<8x16xbf16> to vector<8x8xbf16>
    %cst_37 = arith.constant dense<0.000000e+00> : vector<16x8xf32>
    %182 = tpu.matmul %168, %180, %cst_37 {dimension_numbers = #tpu.dot_dimension_numbers<[1], [1], [0], [0], [0, 0, 1, 0], [], []>} : vector<16x8xbf16>, vector<8x8xbf16>, vector<16x8xf32> -> vector<16x8xf32>
    %183 = arith.addf %182, %39 : vector<16x8xf32>
    %cst_38 = arith.constant dense<0xFF800000> : vector<16xf32>
    %184 = vector.multi_reduction <maximumf>, %183, %cst_38 [1] : vector<16x8xf32> to vector<16xf32>
    %185 = vector.shape_cast %184 : vector<16xf32> to vector<16x1xf32>
    %186 = vector.broadcast %185 : vector<16x1xf32> to vector<16x8xf32>
    %187 = arith.subf %183, %186 : vector<16x8xf32>
    %188 = math.exp %187 : vector<16x8xf32>
    %cst_39 = arith.constant dense<0.000000e+00> : vector<16xf32>
    %189 = vector.multi_reduction <add>, %188, %cst_39 [1] : vector<16x8xf32> to vector<16xf32>
    %190 = vector.shape_cast %189 : vector<16xf32> to vector<16x1xf32>
    %191 = arith.truncf %188 : vector<16x8xf32> to vector<16x8xbf16>
    %cst_40 = arith.constant dense<0.000000e+00> : vector<16x8xf32>
    %192 = tpu.matmul %191, %181, %cst_40 {dimension_numbers = #tpu.dot_dimension_numbers<[1], [0], [0], [1], [0, 0, 1, 1], [], []>} : vector<16x8xbf16>, vector<8x8xbf16>, vector<16x8xf32> -> vector<16x8xf32>
    %193 = vector.broadcast %190 : vector<16x1xf32> to vector<16x8xf32>
    %194 = arith.divf %192, %193 : vector<16x8xf32>
    %195 = arith.truncf %194 : vector<16x8xf32> to vector<16x8xbf16>
    %196 = vector.extract_strided_slice %195 {offsets = [0, 0], sizes = [8, 8], strides = [1, 1]} : vector<16x8xbf16> to vector<8x8xbf16>
    %197 = vector.extract_strided_slice %195 {offsets = [8, 0], sizes = [8, 8], strides = [1, 1]} : vector<16x8xbf16> to vector<8x8xbf16>
    %198 = tpu.concatenate %196, %197 in 1 : vector<8x8xbf16>, vector<8x8xbf16> -> vector<8x16xbf16>
    %c0_41 = arith.constant 0 : index
    %c0_42 = arith.constant 0 : index
    %c0_43 = arith.constant 0 : index
    %199 = vector.load %arg3[%c0_41, %c0_42, %c0_43] : memref<1x32x32xbf16, #tpu.memory_space<vmem>>, vector<1x16x32xbf16>
    %200 = vector.shape_cast %199 : vector<1x16x32xbf16> to vector<16x32xbf16>
    %cst_44 = arith.constant dense<0.000000e+00> : vector<8x32xf32>
    %201 = tpu.matmul %198, %200, %cst_44 {dimension_numbers = #tpu.dot_dimension_numbers<[1], [0], [0], [1], [0, 0, 1, 1], [], []>} : vector<8x16xbf16>, vector<16x32xbf16>, vector<8x32xf32> -> vector<8x32xf32>
    %202 = arith.addf %152, %201 : vector<8x32xf32>
    %203 = vector.extract_strided_slice %148 {offsets = [0, 16], sizes = [8, 8], strides = [1, 1]} : vector<8x32xbf16> to vector<8x8xbf16>
    %204 = vector.extract_strided_slice %148 {offsets = [0, 24], sizes = [8, 8], strides = [1, 1]} : vector<8x32xbf16> to vector<8x8xbf16>
    %205 = tpu.concatenate %203, %204 in 0 : vector<8x8xbf16>, vector<8x8xbf16> -> vector<16x8xbf16>
    %206 = arith.extf %205 : vector<16x8xbf16> to vector<16x8xf32>
    %207 = vector.extract_strided_slice %206 {offsets = [0, 0], sizes = [16, 4], strides = [1, 1]} : vector<16x8xf32> to vector<16x4xf32>
    %208 = vector.extract_strided_slice %206 {offsets = [0, 4], sizes = [16, 4], strides = [1, 1]} : vector<16x8xf32> to vector<16x4xf32>
    %209 = arith.mulf %207, %31 : vector<16x4xf32>
    %210 = arith.mulf %208, %32 : vector<16x4xf32>
    %211 = arith.subf %209, %210 : vector<16x4xf32>
    %212 = arith.mulf %208, %31 : vector<16x4xf32>
    %213 = arith.mulf %207, %32 : vector<16x4xf32>
    %214 = arith.addf %212, %213 : vector<16x4xf32>
    %215 = tpu.concatenate %211, %214 in 1 : vector<16x4xf32>, vector<16x4xf32> -> vector<16x8xf32>
    %cst_45 = arith.constant 0.353553385 : f32
    %216 = vector.broadcast %cst_45 : f32 to vector<16x8xf32>
    %217 = arith.mulf %215, %216 : vector<16x8xf32>
    %218 = arith.truncf %217 : vector<16x8xf32> to vector<16x8xbf16>
    %219 = vector.extract_strided_slice %149 {offsets = [0, 8], sizes = [8, 8], strides = [1, 1]} : vector<8x16xbf16> to vector<8x8xbf16>
    %220 = arith.extf %219 : vector<8x8xbf16> to vector<8x8xf32>
    %221 = vector.extract_strided_slice %220 {offsets = [0, 0], sizes = [8, 4], strides = [1, 1]} : vector<8x8xf32> to vector<8x4xf32>
    %222 = vector.extract_strided_slice %220 {offsets = [0, 4], sizes = [8, 4], strides = [1, 1]} : vector<8x8xf32> to vector<8x4xf32>
    %223 = arith.mulf %221, %29 : vector<8x4xf32>
    %224 = arith.mulf %222, %30 : vector<8x4xf32>
    %225 = arith.subf %223, %224 : vector<8x4xf32>
    %226 = arith.mulf %222, %29 : vector<8x4xf32>
    %227 = arith.mulf %221, %30 : vector<8x4xf32>
    %228 = arith.addf %226, %227 : vector<8x4xf32>
    %229 = tpu.concatenate %225, %228 in 1 : vector<8x4xf32>, vector<8x4xf32> -> vector<8x8xf32>
    %230 = arith.truncf %229 : vector<8x8xf32> to vector<8x8xbf16>
    %231 = vector.extract_strided_slice %150 {offsets = [0, 8], sizes = [8, 8], strides = [1, 1]} : vector<8x16xbf16> to vector<8x8xbf16>
    %cst_46 = arith.constant dense<0.000000e+00> : vector<16x8xf32>
    %232 = tpu.matmul %218, %230, %cst_46 {dimension_numbers = #tpu.dot_dimension_numbers<[1], [1], [0], [0], [0, 0, 1, 0], [], []>} : vector<16x8xbf16>, vector<8x8xbf16>, vector<16x8xf32> -> vector<16x8xf32>
    %233 = arith.addf %232, %39 : vector<16x8xf32>
    %cst_47 = arith.constant dense<0xFF800000> : vector<16xf32>
    %234 = vector.multi_reduction <maximumf>, %233, %cst_47 [1] : vector<16x8xf32> to vector<16xf32>
    %235 = vector.shape_cast %234 : vector<16xf32> to vector<16x1xf32>
    %236 = vector.broadcast %235 : vector<16x1xf32> to vector<16x8xf32>
    %237 = arith.subf %233, %236 : vector<16x8xf32>
    %238 = math.exp %237 : vector<16x8xf32>
    %cst_48 = arith.constant dense<0.000000e+00> : vector<16xf32>
    %239 = vector.multi_reduction <add>, %238, %cst_48 [1] : vector<16x8xf32> to vector<16xf32>
    %240 = vector.shape_cast %239 : vector<16xf32> to vector<16x1xf32>
    %241 = arith.truncf %238 : vector<16x8xf32> to vector<16x8xbf16>
    %cst_49 = arith.constant dense<0.000000e+00> : vector<16x8xf32>
    %242 = tpu.matmul %241, %231, %cst_49 {dimension_numbers = #tpu.dot_dimension_numbers<[1], [0], [0], [1], [0, 0, 1, 1], [], []>} : vector<16x8xbf16>, vector<8x8xbf16>, vector<16x8xf32> -> vector<16x8xf32>
    %243 = vector.broadcast %240 : vector<16x1xf32> to vector<16x8xf32>
    %244 = arith.divf %242, %243 : vector<16x8xf32>
    %245 = arith.truncf %244 : vector<16x8xf32> to vector<16x8xbf16>
    %246 = vector.extract_strided_slice %245 {offsets = [0, 0], sizes = [8, 8], strides = [1, 1]} : vector<16x8xbf16> to vector<8x8xbf16>
    %247 = vector.extract_strided_slice %245 {offsets = [8, 0], sizes = [8, 8], strides = [1, 1]} : vector<16x8xbf16> to vector<8x8xbf16>
    %248 = tpu.concatenate %246, %247 in 1 : vector<8x8xbf16>, vector<8x8xbf16> -> vector<8x16xbf16>
    %c0_50 = arith.constant 0 : index
    %c16_51 = arith.constant 16 : index
    %c0_52 = arith.constant 0 : index
    %249 = vector.load %arg3[%c0_50, %c16_51, %c0_52] : memref<1x32x32xbf16, #tpu.memory_space<vmem>>, vector<1x16x32xbf16>
    %250 = vector.shape_cast %249 : vector<1x16x32xbf16> to vector<16x32xbf16>
    %cst_53 = arith.constant dense<0.000000e+00> : vector<8x32xf32>
    %251 = tpu.matmul %248, %250, %cst_53 {dimension_numbers = #tpu.dot_dimension_numbers<[1], [0], [0], [1], [0, 0, 1, 1], [], []>} : vector<8x16xbf16>, vector<16x32xbf16>, vector<8x32xf32> -> vector<8x32xf32>
    %252 = arith.addf %202, %251 : vector<8x32xf32>
    %253 = arith.truncf %252 : vector<8x32xf32> to vector<8x32xbf16>
    %254 = arith.addf %151, %253 : vector<8x32xbf16>
    %c8 = arith.constant 8 : index
    %c0_54 = arith.constant 0 : index
    %255 = vector.load %arg10[%c8, %c0_54] : memref<16x32xbf16, #tpu.memory_space<vmem>>, vector<8x32xbf16>
    tpu.vector_store %arg10[%c8, %c0_54], %254 {strides = array<i32>} : memref<16x32xbf16, #tpu.memory_space<vmem>>, vector<8x32xbf16>,
    %c0_55 = arith.constant 0 : index
    %c0_56 = arith.constant 0 : index
    %256 = vector.load %arg10[%c0_55, %c0_56] : memref<16x32xbf16, #tpu.memory_space<vmem>>, vector<16x32xbf16>
    %257 = arith.extf %256 : vector<16x32xbf16> to vector<16x32xf32>
    %258 = arith.mulf %257, %257 : vector<16x32xf32>
    %cst_57 = arith.constant dense<0.000000e+00> : vector<16xf32>
    %259 = vector.multi_reduction <add>, %258, %cst_57 [1] : vector<16x32xf32> to vector<16xf32>
    %260 = vector.shape_cast %259 : vector<16xf32> to vector<16x1xf32>
    %cst_58 = arith.constant 3.200000e+01 : f32
    %261 = vector.broadcast %cst_58 : f32 to vector<16x1xf32>
    %262 = arith.divf %260, %261 : vector<16x1xf32>
    %cst_59 = arith.constant 9.99999997E-7 : f32
    %263 = vector.broadcast %cst_59 : f32 to vector<16x1xf32>
    %264 = arith.addf %263, %262 : vector<16x1xf32>
    %265 = math.rsqrt %264 : vector<16x1xf32>
    %266 = vector.broadcast %265 : vector<16x1xf32> to vector<16x32xf32>
    %267 = arith.mulf %257, %266 : vector<16x32xf32>
    %c0_60 = arith.constant 0 : index
    %c0_61 = arith.constant 0 : index
    %c0_62 = arith.constant 0 : index
    %268 = vector.load %arg7[%c0_60, %c0_61, %c0_62] : memref<1x1x32xbf16, #tpu.memory_space<vmem>>, vector<1x1x32xbf16>
    %269 = vector.shape_cast %268 : vector<1x1x32xbf16> to vector<1x32xbf16>
    %270 = arith.extf %269 : vector<1x32xbf16> to vector<1x32xf32>
    %271 = vector.broadcast %270 : vector<1x32xf32> to vector<16x32xf32>
    %272 = arith.mulf %267, %271 : vector<16x32xf32>
    %273 = arith.truncf %272 : vector<16x32xf32> to vector<16x32xbf16>
    %c0_63 = arith.constant 0 : index
    %c0_64 = arith.constant 0 : index
    %c0_65 = arith.constant 0 : index
    %274 = vector.load %arg4[%c0_63, %c0_64, %c0_65] : memref<1x32x192xbf16, #tpu.memory_space<vmem>>, vector<1x32x192xbf16>
    %275 = vector.shape_cast %274 : vector<1x32x192xbf16> to vector<32x192xbf16>
    %cst_66 = arith.constant dense<0.000000e+00> : vector<16x192xf32>
    %276 = tpu.matmul %273, %275, %cst_66 {dimension_numbers = #tpu.dot_dimension_numbers<[1], [0], [0], [1], [0, 0, 1, 1], [], []>} : vector<16x32xbf16>, vector<32x192xbf16>, vector<16x192xf32> -> vector<16x192xf32>
    %277 = vector.extract_strided_slice %276 {offsets = [0, 0], sizes = [16, 96], strides = [1, 1]} : vector<16x192xf32> to vector<16x96xf32>
    %278 = vector.extract_strided_slice %276 {offsets = [0, 96], sizes = [16, 96], strides = [1, 1]} : vector<16x192xf32> to vector<16x96xf32>
    %279 = arith.negf %277 : vector<16x96xf32>
    %280 = math.exp %279 : vector<16x96xf32>
    %cst_67 = arith.constant 1.000000e+00 : f32
    %281 = vector.broadcast %cst_67 : f32 to vector<16x96xf32>
    %282 = arith.addf %281, %280 : vector<16x96xf32>
    %283 = arith.divf %281, %282 : vector<16x96xf32>
    %284 = arith.mulf %277, %283 : vector<16x96xf32>
    %285 = arith.mulf %284, %278 : vector<16x96xf32>
    %286 = arith.truncf %285 : vector<16x96xf32> to vector<16x96xbf16>
    %c0_68 = arith.constant 0 : index
    %c0_69 = arith.constant 0 : index
    %c0_70 = arith.constant 0 : index
    %287 = vector.load %arg5[%c0_68, %c0_69, %c0_70] : memref<1x96x32xbf16, #tpu.memory_space<vmem>>, vector<1x96x32xbf16>
    %288 = vector.shape_cast %287 : vector<1x96x32xbf16> to vector<96x32xbf16>
    %cst_71 = arith.constant dense<0.000000e+00> : vector<16x32xf32>
    %289 = tpu.matmul %286, %288, %cst_71 {dimension_numbers = #tpu.dot_dimension_numbers<[1], [0], [0], [1], [0, 0, 1, 1], [], []>} : vector<16x96xbf16>, vector<96x32xbf16>, vector<16x32xf32> -> vector<16x32xf32>
    %290 = arith.truncf %289 : vector<16x32xf32> to vector<16x32xbf16>
    %291 = arith.addf %256, %290 : vector<16x32xbf16>
    %c0_72 = arith.constant 0 : index
    %c0_73 = arith.constant 0 : index
    %292 = vector.load %arg10[%c0_72, %c0_73] : memref<16x32xbf16, #tpu.memory_space<vmem>>, vector<16x32xbf16>
    tpu.vector_store %arg10[%c0_72, %c0_73], %291 {strides = array<i32>} : memref<16x32xbf16, #tpu.memory_space<vmem>>, vector<16x32xbf16>,
    %c1_i32 = arith.constant 1 : i32
    %293 = arith.cmpi eq, %arg0, %c1_i32 : i32
    %294 = arith.extui %293 : i1 to i32
    %c0_i32_74 = arith.constant 0 : i32
    %295 = arith.cmpi ne, %294, %c0_i32_74 : i32
    scf.if %295 {
      %296 = vector.extract_strided_slice %291 {offsets = [0, 0], sizes = [8, 32], strides = [1, 1]} : vector<16x32xbf16> to vector<8x32xbf16>
      %c0_75 = arith.constant 0 : index
      %c0_76 = arith.constant 0 : index
      %c0_77 = arith.constant 0 : index
      %297 = vector.load %arg9[%c0_75, %c0_76, %c0_77] : memref<2x8x32xbf16, #tpu.memory_space<vmem>>, vector<1x8x32xbf16>
      %298 = vector.shape_cast %297 : vector<1x8x32xbf16> to vector<8x32xbf16>
      %299 = vector.shape_cast %296 : vector<8x32xbf16> to vector<1x8x32xbf16>
      tpu.vector_store %arg9[%c0_75, %c0_76, %c0_77], %299 {strides = array<i32>} : memref<2x8x32xbf16, #tpu.memory_space<vmem>>, vector<1x8x32xbf16>,
      %300 = vector.extract_strided_slice %291 {offsets = [8, 0], sizes = [8, 32], strides = [1, 1]} : vector<16x32xbf16> to vector<8x32xbf16>
      %c1 = arith.constant 1 : index
      %c0_78 = arith.constant 0 : index
      %c0_79 = arith.constant 0 : index
      %301 = vector.load %arg9[%c1, %c0_78, %c0_79] : memref<2x8x32xbf16, #tpu.memory_space<vmem>>, vector<1x8x32xbf16>
      %302 = vector.shape_cast %301 : vector<1x8x32xbf16> to vector<8x32xbf16>
      %303 = vector.shape_cast %300 : vector<8x32xbf16> to vector<1x8x32xbf16>
      tpu.vector_store %arg9[%c1, %c0_78, %c0_79], %303 {strides = array<i32>} : memref<2x8x32xbf16, #tpu.memory_space<vmem>>, vector<1x8x32xbf16>,
    } else {
    }
    return
  }
  func.func @transform_0(%arg0: i32) -> (i32, i32, i32) {
    %c0_i32 = arith.constant 0 : i32
    %c0_i32_0 = arith.constant 0 : i32
    %c0_i32_1 = arith.constant 0 : i32
    %c0_i32_2 = arith.constant 0 : i32
    return %c0_i32, %c0_i32_0, %c0_i32_1 : i32, i32, i32
  }
  func.func @transform_1(%arg0: i32) -> (i32, i32, i32) {
    %c0_i32 = arith.constant 0 : i32
    %c0_i32_0 = arith.constant 0 : i32
    %c0_i32_1 = arith.constant 0 : i32
    return %arg0, %c0_i32, %c0_i32_0 : i32, i32, i32
  }
  func.func @transform_2(%arg0: i32) -> (i32, i32, i32) {
    %c0_i32 = arith.constant 0 : i32
    %c0_i32_0 = arith.constant 0 : i32
    %c0_i32_1 = arith.constant 0 : i32
    return %arg0, %c0_i32, %c0_i32_0 : i32, i32, i32
  }
  func.func @transform_3(%arg0: i32) -> (i32, i32, i32) {
    %c0_i32 = arith.constant 0 : i32
    %c0_i32_0 = arith.constant 0 : i32
    %c0_i32_1 = arith.constant 0 : i32
    return %arg0, %c0_i32, %c0_i32_0 : i32, i32, i32
  }
  func.func @transform_4(%arg0: i32) -> (i32, i32, i32) {
    %c0_i32 = arith.constant 0 : i32
    %c0_i32_0 = arith.constant 0 : i32
    %c0_i32_1 = arith.constant 0 : i32
    return %arg0, %c0_i32, %c0_i32_0 : i32, i32, i32
  }
  func.func @transform_5(%arg0: i32) -> (i32, i32, i32) {
    %c0_i32 = arith.constant 0 : i32
    %c0_i32_0 = arith.constant 0 : i32
    %c0_i32_1 = arith.constant 0 : i32
    return %arg0, %c0_i32, %c0_i32_0 : i32, i32, i32
  }
  func.func @transform_6(%arg0: i32) -> (i32, i32, i32) {
    %c0_i32 = arith.constant 0 : i32
    %c0_i32_0 = arith.constant 0 : i32
    %c0_i32_1 = arith.constant 0 : i32
    return %arg0, %c0_i32, %c0_i32_0 : i32, i32, i32
  }
  func.func @transform_7(%arg0: i32) -> (i32, i32) {
    %c0_i32 = arith.constant 0 : i32
    %c0_i32_0 = arith.constant 0 : i32
    %c0_i32_1 = arith.constant 0 : i32
    return %c0_i32, %c0_i32_0 : i32, i32
  }
  func.func @transform_8(%arg0: i32) -> (i32, i32, i32) {
    %c0_i32 = arith.constant 0 : i32
    %c0_i32_0 = arith.constant 0 : i32
    %c0_i32_1 = arith.constant 0 : i32
    %c0_i32_2 = arith.constant 0 : i32
    return %c0_i32, %c0_i32_0, %c0_i32_1 : i32, i32, i32
  }
}

</mosaic_0001>

<bundles_post_ra>
// kernel: tpu_custom_call.1
= control target key start
LH: loop header
LB: loop body
LE: loop exit
PB: predicated region body
PF: predicated region fallthrough
CT: control target
= control target key end

     0   :  { %13 = vsyncpa [#allocation4], 0  ;;  %s2819_s0 = inlined_call_operand.hbm [shape: bf16[2,8,32], index: 0, kind: input, shape index: {}]   ;;  %s2820_s1 = inlined_call_operand.vmem [shape: bf16[2,32,64], index: 1, kind: input, shape index: {}]   ;;  %s2821_s2 = inlined_call_operand.vmem [shape: bf16[2,32,32], index: 2, kind: input, shape index: {}]   ;;  %s2822_s3 = inlined_call_operand.vmem [shape: bf16[2,32,192], index: 3, kind: input, shape index: {}]   ;;  %s2823_s4 = inlined_call_operand.vmem [shape: bf16[2,96,32], index: 4, kind: input, shape index: {}]   ;;  %s2824_s5 = inlined_call_operand.vmem [shape: bf16[2,1,32], index: 5, kind: input, shape index: {}]   ;;  %s2825_s6 = inlined_call_operand.vmem [shape: bf16[2,1,32], index: 6, kind: input, shape index: {}]   ;;  %s2826_s7 = inlined_call_operand.vmem [shape: f32[8,8], index: 7, kind: input, shape index: {}]   ;;  %s2827_s8 = inlined_call_operand.hbm [shape: bf16[2,8,32], index: 8, kind: output, shape index: {}]  }
   0x1   :  { %14 = vsyncpa [#allocation5], 0  ;;  %s2356_s27 = smov 0  }
   0x2 LB: > { %s2362_s28 = sadd.s32 4294967295, %s2283_s27   ;;  %p1883_p0 = scmp.ge.s32.totalorder %s2283_s27, 1  ;;  %s2283_s27 = sphi %s2356_s27, %s20_s27  }
   0x3   : > { %p244_p1 = scmp.lt.s32.totalorder %s2283_s27, 3  ;;  %s2285_s29 = smov [#allocation3]  }
   0x4   : > { %s256_s30 = sshll.u32 %s2285_s29, 4  ;;  %p2828_p4 = scmp.eq.s32.totalorder %s2362_s28, 0  ;;  %s257_s30 = int_to_ptr.vmem [resolvable:$true] %s256_s30 }
   0x5   : > { %p2367_p3 = pnand %p1883_p0, %p244_p1  ;;  %s2215_s13 = scalar_lea.hbm %s2819_s0, 128 }
   0x6   : > { %p2216_p7 = scmp.ne.s32.totalorder %s2819_s0, %s2215_s13  ;;  %p2222_p11 = scmp.lt.u32.totalorder %s2215_s13, %s2819_s0 }
   0x7   : > { %s2830_s9 = scalar_select %p2367_p3, 1, 0 }
   0x8   : > { %p2086_p5 = pneg %p2367_p3 }
   0xa   : > { %p2376_p6 = pnand %p2828_p4, %p2086_p5 }
   0xc   : > { %p2217_p8 = pneg %p2376_p6 }
   0xe   : > { %p2218_p9 = pnand %p2217_p8, %p2216_p7 }
  0x10   : > { %p2219_p10 = pneg %p2218_p9 }
  0x12   : > { %p2224_p12 = pnand %p2222_p11, %p2219_p10 }
  0x14   : > { %2227 = shalt.err (!%p2224_p12)
}
  0x15   : > { %s2228_s18 = scalar_lea.vmem %s257_s30, 128  ;;  %p2236_p5 = scmp.lt.s32.totalorder %s257_s30, %s257_s30 }
  0x16   : > { %p2229_p13 = scmp.ne.s32.totalorder %s257_s30, %s2228_s18  ;;  %p2237_p2 = scmp.lt.s32.totalorder %s2228_s18, %s2228_s18 }
  0x18   : > { %p2231_p0 = pnand %p2229_p13, %p2217_p8  ;;  %p2238_p4 = por %p2237_p2, %p2236_p5 }
  0x1a   : > { %p2232_p1 = pneg %p2231_p0 }
  0x1c   : > { %p2239_p3 = pnand %p2238_p4, %p2232_p1 }
  0x1e   : > { %2242 = shalt.err (!%p2239_p3)
}
  0x1f   : > { %s2286_s19 = smov 64   ;;  %s2287_s20 = smov 4  }
  0x20   : > { %2089 = dma.hbm_to_vmem [thread:$0]  (!%p2376_p6), %s2819_s0, 128, %s257_s30, [#allocation4], %s2286_s19, %s2286_s19, %s2287_s20  }
  0x21   : > { %p2832_p7 = scmp.ne.s32.totalorder %s2830_s9, 0 }
  0x22   : > { %p2833_p9 = scmp.eq.s32.totalorder (!%p2832_p7), %s2362_s28, 0 }
  0x23   : > { %319 = sbr.rel (%p2832_p7) target bundleno = 3243 (0xcab), region = 52 }
  0x2a   : > { %2274 = dma.done.wait (%p2833_p9), [#allocation4], 128   ;;  %p2834_p8 = pmov %p2833_p9 }
  0x2b   : > { %p369_p2 = scmp.lt.s32.totalorder %s2362_s28, 1  ;;  %p2835_p3 = scmp.ne.s32.totalorder %s2362_s28, 0 }
  0x2c   : > { %2276 = vsyncadd (%p2834_p8), [#allocation4], 4294967168  ;;  %v400_v0 = vld [vmem:[#allocation3] sm:$0xf] (!%p2835_p3)  ;;  %vm401_vm0 = vcmask (!%p2835_p3), 257024   ;;  %vm409_vm1 = vcmask (!%p2835_p3), 261124  }
  0x2d   : > { %s2404_s23 = scalar_select %p369_p2, %s2362_s28, 1 }
  0x2e   : > { %399 = sbr.rel (%p2835_p3) target bundleno = 53 (0x35), region = 60  ;;  %402 = vst.msk [vmem:[#allocation2] sm:$0xf] (!%p2835_p3), %vm401_vm0, %v400_v0  ;;  %v2128_v1 = vld [vmem:[#allocation3 + $0x4] ss:$0 sps:$4 sm:$0xff] (!%p2835_p3)  }
  0x2f   : > { %s1936_s24 = sshll.u32 %s2404_s23, 4  ;;  %s1938_s25 = sshll.u32 %s2404_s23, 5  ;;  %410 = vst.msk [vmem:[#allocation2] sm:$0xf0] (!%p2835_p3), %vm409_vm1, %v2128_v1 }
  0x30   : > { %s2411_s30 = scalar_lea.vmem %s2820_s1, %s1936_s24  ;;  %s2416_s11 = scalar_lea.vmem %s2821_s2, %s1936_s24 }
  0x31   : > { %s2421_s14 = scalar_lea.vmem %s2822_s3, %s1938_s25  ;;  %s2077_s15 = smul.u32 48, %s2404_s23 }
  0x32   : > { %s391_s18 = scalar_lea.vmem %s2824_s5, %s2404_s23  ;;  %s394_s21 = scalar_lea.vmem %s2825_s6, %s2404_s23 }
  0x33   : > { %s2435_s29 = scalar_lea.vmem %s2823_s4, %s2077_s15 }
  0x35 PF: > { %vm416_vm2 = vcmask 261120   ;;  %v2149_v9 = vld [vmem:[%s2411_s30] sm:$0xff]   ;;  %v2288_v10 = vmov 0.0   ;;  %vm2289_vm3 = vmmov 0   ;;  %v2150_v11 = vld [vmem:[%s2411_s30 + $0x8] sm:$0xff]   ;;  %s2290_s9 = smov 32   ;;  %v434_v18 = vlaneseq }
  0x36   : > { %v2439_v2 = vld [vmem:[#allocation2] sm:$0xff]  ;;  %1973 = vmatprep.subr.bf16.mxu1 %v2288_v10  ;;  %1977 = vmatprep.mubr.msk.bf16.mxu1 %vm2289_vm3, %v2288_v10  ;;  %s2291_s30 = smov 36   ;;  %s2292_s10 = smov 28   ;;  %vm513_vm4 = vcmask 1043456   ;;  %vm553_vm5 = vcmask 31744   ;;  %vm592_vm6 = vcmask 64512  }
  0x37   : > { %v412_v3 = vunpack.c.l.bf16 %v2439_v2  ;;  %v413_v4 = vunpack.c.h.bf16 %v2439_v2  ;;  %1974 = vmatpush3.bf16.msra.mxu1 %v2149_v9  ;;  %1987 = vmatprep.subr.bf16.mxu0 %v2288_v10  ;;  %v2458_v12 = vld [vmem:[%s2826_s7] sm:$0xff]  ;;  %s2293_s12 = smov 40   ;;  %v2466_v20 = vshrl.u32 %v434_v18, 7  ;;  %s2294_s16 = smov 124   ;;  %vm941_vm8 = vcmask 130048  }
  0x38   : > { %1975 = vmatprep.subr.bf16.mxu1 %v2288_v10  ;;  %1989 = vmatprep.mubr.msk.bf16.mxu0 %vm2289_vm3, %v2288_v10  ;;  %v432_v21 = vld [vmem:[%s391_s18] sm:$0x1]  ;;  %s2295_s17 = smov 16   ;;  %s2296_s18 = smov 20   ;;  %vm1034_vm9 = vcmask 257024   ;;  %vm1528_vm10 = vcmask 261124  }
  0x39   : > { %v414_v5 = vmul.f32 %v412_v3, %v412_v3  ;;  %v415_v6 = vmul.f32 %v413_v4, %v413_v4  ;;  %560 = vrot.lane.b32.xlu1 %v2458_v12, %s2290_s9  ;;  %v433_v22 = vunpack.c.l.bf16 %v432_v21  ;;  %v436_v23 = vsub.s32 0, %v2466_v20  ;;  %s2297_s19 = smov 120   ;;  %s2298_s20 = smov 12  }
  0x3a   : > { %s2299_s22 = smov 4   ;;  %s2300_s26 = smov 44   ;;  %vm1709_vm11 = vcmask 785408  }
  0x3b   : > { %v417_v7 = vsel %vm416_vm2, %v414_v5, 0.0  ;;  %v420_v8 = vsel %vm416_vm2, %v415_v6, 0.0  ;;  %1976 = vmatpush3.bf16.msra.mxu1 %v2150_v11  ;;  %v437_v26 = vrot.slane %v433_v22, %v436_v23  ;;  %s2301_s24 = smov 96   ;;  %s2302_s25 = smov 88  }
  0x3c   : > { %418 = vadd.xlane.f32.xlu0 %v417_v7  ;;  %1981 = vmatprep.subr.bf16.mxu1 %v2288_v10  ;;  %s2307_s13 = smov 8   ;;  %p1930_p4 = scmp.ne.s32.totalorder %s2362_s28, 1 }
  0x3d   : > { %573 = vrot.lane.b32.xlu1 %v2458_v12, %s2292_s10  ;;  %s2305_s10 = smov 80  }
  0x40   : > { %421 = vadd.xlane.f32.xlu0 %v420_v8 }
  0x41   : > { %778 = vrot.lane.b32.xlu1 %v2458_v12, %s2293_s12  ;;  %s2306_s12 = smov 72  }
  0x45   : > { %722 = vrot.lane.b32.xlu1 %v2458_v12, %s2295_s17 }
  0x56   : > { %569 = vrot.lane.b32.xlu0 %v2458_v12, %s2291_s30  ;;  %s2303_s30 = smov 112  }
  0x5a   : > { %538 = vrot.lane.b32.xlu0 %v2458_v12, %s2294_s16 }
  0x5e   : > { %737 = vrot.lane.b32.xlu0 %v2458_v12, %s2296_s18 }
  0xab   : > { %v2483_v32 = vpop.permute.xlu1 %560 }
  0xaf   : > { %v2485_v33 = vpop.permute.xlu1 %573 }
  0xb3   : > { %v2489_v39 = vpop.permute.xlu1 %778 }
  0xb7   : > { %v2509_v47 = vpop.permute.xlu1 %722 }
  0xc9   : > { %v419_v13 = vpop.xlane.xlu0 %418 }
  0xca   : > { %v424_v14 = vmul.f32 0.03125, %v419_v13 }
  0xcc   : > { %v426_v15 = vadd.f32 1e-06, %v424_v14 }
  0xcd   : > { %v422_v16 = vpop.xlane.xlu0 %421 }
  0xce   : > { %2167 = vrsqrt.f32 %v426_v15  ;;  %v425_v17 = vmul.f32 0.03125, %v422_v16 }
  0xd0   : > { %v427_v19 = vadd.f32 1e-06, %v425_v17 }
  0xd1   : > { %v2504_v45 = vpop.permute.xlu0 %569 }
  0xd2   : > { %2169 = vrsqrt.f32 %v427_v19 }
  0xd5   : > { %v2525_v58 = vpop.permute.xlu0 %538 }
  0xd8   : > { %v2168_v24 = vpop.eup %2167 }
  0xd9   : > { %v430_v25 = vmul.f32 %v2168_v24, %v412_v3  ;;  %v2531_v63 = vpop.permute.xlu0 %737 }
  0xdb   : > { %v438_v29 = vmul.f32 %v437_v26, %v430_v25 }
  0xdc   : > { %v2170_v27 = vpop.eup %2169 }
  0xdd   : > { %v431_v28 = vmul.f32 %v2170_v27, %v413_v4 }
  0xdf   : > { %v439_v30 = vmul.f32 %v437_v26, %v431_v28 }
  0xe1   : > { %v440_v31 = vpack.c.bf16 %v439_v30, %v438_v29 }
  0xe3   : > { %1978 = vmatmul.mubr.msk.bf16.vlgmr.msra.gmra.mrb[0].mxu1 %vm416_vm2, %v440_v31 }
  0xe4   : > { %1983 = vmatprep.mubr.msk.bf16.mxu1 %vm2289_vm3, %v2288_v10 }
 0x1b6   : > { %v494_v34 = vpop.f32.mrb[0].mxu1 }
 0x1b7   : > { %v1979_v35 = vpop.f32.mrb[1].mxu1 }
 0x1b8   : > { %v497_v36 = vpop.f32.mrb[2].mxu1 }
 0x1b9   : > { %v2487_v37 = vpack.c.bf16 %v497_v36, %v494_v34  ;;  %v1980_v38 = vpop.f32.mrb[3].mxu1 }
 0x1bb   : > { %v2492_v40 = vrot.slane %v2487_v37, 4  ;;  %v559_v41 = vunpack.c.l.bf16 %v2487_v37 }
 0x1bd   : > { %v781_v42 = vmul.f32 %v2489_v39, %v559_v41  ;;  %511 = vrot.lane.b32.xlu1 %v2492_v40, %s2297_s19  ;;  %v563_v43 = vmul.f32 %v2483_v32, %v559_v41  ;;  %v576_v44 = vmul.f32 %v2485_v33, %v559_v41  ;;  %v572_v46 = vmul.f32 %v2504_v45, %v559_v41 }
 0x1bf   : > { %783 = vrot.lane.b32.xlu0 %v781_v42, %s2294_s16 }
 0x1c1   : > { %742 = vrot.lane.b32.xlu1 %v2458_v12, %s2298_s20 }
 0x1c5   : > { %565 = vrot.lane.b32.xlu1 %v563_v43, %s2294_s16 }
 0x1c9   : > { %578 = vrot.lane.b32.xlu1 %v576_v44, %s2299_s22 }
 0x1cd   : > { %787 = vrot.lane.b32.xlu1 %v2458_v12, %s2300_s26 }
 0x1d1   : > { %792 = vrot.lane.b32.xlu1 %v572_v46, %s2299_s22 }
 0x22f   : > { %v512_v48 = vpop.permute.xlu1 %511 }
 0x230   : > { %v516_v49 = vsel %vm513_vm4, %v2487_v37, %v512_v48 }
 0x231   : > { %v2513_v50 = vunpack.c.l.bf16 %v516_v49  ;;  %v519_v51 = vunpack.c.h.bf16 %v516_v49  ;;  %v784_v7 = vpop.permute.xlu0 %783 }
 0x232   : > { %v786_v11 = vsub.f32 %v781_v42, %v784_v7 }
 0x233   : > { %v2515_v52 = vpop.permute.xlu1 %742  ;;  %v726_v53 = vmul.f32 %v2509_v47, %v519_v51  ;;  %v725_v54 = vmul.f32 %v2509_v47, %v2513_v50  ;;  %v521_v1 = vmul.f32 %v519_v51, %v2458_v12  ;;  %v520_v3 = vmul.f32 %v2513_v50, %v2458_v12 }
 0x234   : > { %v746_v56 = vmul.f32 %v2515_v52, %v519_v51  ;;  %v745_v57 = vmul.f32 %v2515_v52, %v2513_v50  ;;  %v542_v5 = vmul.f32 %v2525_v58, %v519_v51  ;;  %v541_v9 = vmul.f32 %v2525_v58, %v2513_v50 }
 0x235   : > { %731 = vrot.lane.b32.xlu0 %v726_v53, %s2294_s16  ;;  %729 = vrot.lane.b32.xlu1 %v725_v54, %s2294_s16  ;;  %v740_v19 = vmul.f32 %v2531_v63, %v2513_v50  ;;  %v741_v21 = vmul.f32 %v2531_v63, %v519_v51 }
 0x237   : > { %v566_v55 = vpop.permute.xlu1 %565 }
 0x238   : > { %v568_v60 = vsub.f32 %v563_v43, %v566_v55 }
 0x239   : > { %751 = vrot.lane.b32.xlu0 %v746_v56, %s2299_s22  ;;  %749 = vrot.lane.b32.xlu1 %v745_v57, %s2299_s22 }
 0x23b   : > { %v579_v59 = vpop.permute.xlu1 %578 }
 0x23c   : > { %v581_v61 = vadd.f32 %v579_v59, %v572_v46 }
 0x23d   : > { %533 = vrot.lane.b32.xlu0 %v2458_v12, %s2299_s22 }
 0x23e   : > { %v2129_v62 = vpack.i.bf16 %v581_v61, %v568_v60 }
 0x23f   : > { %v2533_v0 = vpop.permute.xlu1 %787 }
 0x240   : > { %2130 = vrot.lane.b32.xlu1 %v2129_v62, %s2301_s24  ;;  %v790_v6 = vmul.f32 %v2533_v0, %v559_v41 }
 0x241   : > { %526 = vrot.lane.b32.xlu0 %v521_v1, %s2294_s16 }
 0x243   : > { %v793_v4 = vpop.permute.xlu1 %792 }
 0x244   : > { %524 = vrot.lane.b32.xlu1 %v520_v3, %s2294_s16  ;;  %v795_v8 = vadd.f32 %v793_v4, %v790_v6 }
 0x245   : > { %547 = vrot.lane.b32.xlu0 %v542_v5, %s2299_s22 }
 0x246   : > { %v2134_v13 = vpack.i.bf16 %v795_v8, %v786_v11 }
 0x248   : > { %545 = vrot.lane.b32.xlu1 %v541_v9, %s2299_s22 }
 0x24c   : > { %2135 = vrot.lane.b32.xlu1 %v2134_v13, %s2302_s25 }
 0x2a7   : > { %v730_v14 = vpop.permute.xlu1 %729  ;;  %v732_v15 = vpop.permute.xlu0 %731 }
 0x2a8   : > { %v735_v16 = vsub.f32 %v725_v54, %v730_v14  ;;  %v736_v17 = vsub.f32 %v726_v53, %v732_v15  ;;  %v506_v14 = vand.u32 127, %v434_v18  ;;  %v2304_v15 = vmov -1e+30  }
 0x2aa   : > { %759 = vrot.lane.b32.xlu0 %v735_v16, %s2303_s30  ;;  %761 = vrot.lane.b32.xlu1 %v736_v17, %s2303_s30  ;;  %vm507_vm7 = vcmp.ge.s32.totalorder %v2466_v20, %v506_v14  ;;  %v2162_v20 = vld [vmem:[%s2435_s29 + $0x8] sm:$0xff]  }
 0x2ab   : > { %v750_v22 = vpop.permute.xlu1 %749  ;;  %v752_v24 = vpop.permute.xlu0 %751  ;;  %v2578_v16 = vsel %vm507_vm7, 0.0, %v2304_v15 }
 0x2ac   : > { %v755_v25 = vadd.f32 %v750_v22, %v740_v19  ;;  %v756_v26 = vadd.f32 %v752_v24, %v741_v21 }
 0x2ae   : > { %767 = vrot.lane.b32.xlu0 %v755_v25, %s2303_s30  ;;  %769 = vrot.lane.b32.xlu1 %v756_v26, %s2303_s30 }
 0x2af   : > { %v2555_v27 = vpop.permute.xlu0 %533 }
 0x2b0   : > { %v537_v36 = vmul.f32 %v2555_v27, %v519_v51  ;;  %v536_v46 = vmul.f32 %v2555_v27, %v2513_v50 }
 0x2b2   : > { %v2131_v28 = vpop.permute.xlu1 %2130 }
 0x2b3   : > { %v2133_v29 = vunpack.i.h.bf16 %v2131_v28  ;;  %v2132_v30 = vunpack.i.l.bf16 %v2131_v28  ;;  %v527_v31 = vpop.permute.xlu0 %526 }
 0x2b4   : > { %v531_v44 = vsub.f32 %v521_v1, %v527_v31 }
 0x2b5   : > { %v590_v34 = vsel %vm553_vm5, %v2132_v30, %v2133_v29 }
 0x2b6   : > { %v525_v35 = vpop.permute.xlu1 %524  ;;  %v591_v38 = vpack.c.bf16 %v590_v34, %v590_v34 }
 0x2b7   : > { %v548_v41 = vpop.permute.xlu0 %547  ;;  %v530_v49 = vsub.f32 %v520_v3, %v525_v35 }
 0x2b8   : > { %v552_v42 = vadd.f32 %v548_v41, %v537_v36  ;;  %v597_v43 = vsel %vm592_vm6, %v591_v38, 0 }
 0x2b9   : > { %1982 = vmatpush3.bf16.xpose.msra.mxu1 %v597_v43 }
 0x2ba   : > { %v546_v48 = vpop.permute.xlu1 %545  ;;  %1993 = vmatprep.subr.bf16.mxu1 %v2288_v10  ;;  %v555_v53 = vsel %vm553_vm5, %v531_v44, %v552_v42 }
 0x2bb   : > { %v551_v54 = vadd.f32 %v546_v48, %v536_v46  ;;  %v557_v51 = vmul.f32 0.35355338, %v555_v53 }
 0x2bd   : > { %v554_v55 = vsel %vm553_vm5, %v530_v49, %v551_v54 }
 0x2be   : > { %v556_v56 = vmul.f32 0.35355338, %v554_v55  ;;  %v2136_v57 = vpop.permute.xlu1 %2135 }
 0x2bf   : > { %v2138_v59 = vunpack.i.h.bf16 %v2136_v57  ;;  %v2137_v60 = vunpack.i.l.bf16 %v2136_v57 }
 0x2c0   : > { %v558_v61 = vpack.c.bf16 %v557_v51, %v556_v56 }
 0x2c1   : > { %v804_v62 = vsel %vm553_vm5, %v2137_v60, %v2138_v59 }
 0x2c2   : > { %1984 = vmatmul.mubr.msk.bf16.vlgmr.msra.gmra.mrb[4].mxu1 %vm592_vm6, %v558_v61  ;;  %v805_v50 = vpack.c.bf16 %v804_v62, %v804_v62 }
 0x2c3   : > { %1995 = vmatprep.mubr.msk.bf16.mxu1 %vm2289_vm3, %v2288_v10 }
 0x2c4   : > { %v810_v1 = vsel %vm592_vm6, %v805_v50, 0 }
 0x2c5   : > { %1994 = vmatpush3.bf16.xpose.msra.mxu1 %v810_v1 }
 0x2c6   : > { %2005 = vmatprep.subr.bf16.mxu1 %v2288_v10 }
 0x31c   : > { %v762_v3 = vpop.permute.xlu1 %761  ;;  %v760_v4 = vpop.permute.xlu0 %759 }
 0x320   : > { %v770_v5 = vpop.permute.xlu1 %769  ;;  %v768_v6 = vpop.permute.xlu0 %767 }
 0x321   : > { %v774_v7 = vsel %vm553_vm5, %v762_v3, %v770_v5  ;;  %v773_v8 = vsel %vm553_vm5, %v760_v4, %v768_v6 }
 0x322   : > { %v776_v9 = vmul.f32 0.35355338, %v774_v7  ;;  %v775_v11 = vmul.f32 0.35355338, %v773_v8 }
 0x324   : > { %v777_v13 = vpack.c.bf16 %v776_v9, %v775_v11  ;;  %v1076_v9 = vunpack.c.l.bf16 %v2492_v40 }
 0x326   : > { %1996 = vmatmul.mubr.msk.bf16.vlgmr.msra.gmra.mrb[8].mxu1 %vm592_vm6, %v777_v13  ;;  %v1084_v13 = vmul.f32 %v1076_v9, %v2485_v33  ;;  %v2614_v15 = vmul.f32 %v1076_v9, %v2489_v39  ;;  %v1083_v39 = vmul.f32 %v1076_v9, %v2504_v45 }
 0x327   : > { %2007 = vmatprep.mubr.msk.bf16.mxu1 %vm2289_vm3, %v2288_v10 }
 0x395   : > { %v633_v17 = vpop.f32.mrb[4].mxu1 }
 0x396   : > { %v634_v19 = vadd.f32 %v633_v17, %v2578_v16  ;;  %v1985_v21 = vpop.f32.mrb[5].mxu1 }
 0x397   : > { %v636_v22 = vpop.f32.mrb[6].mxu1  ;;  %v1077_v21 = vmul.f32 %v1076_v9, %v2483_v32 }
 0x398   : > { %v637_v24 = vadd.f32 %v636_v22, %v2578_v16  ;;  %v1986_v25 = vpop.f32.mrb[7].mxu1  ;;  %v640_v26 = vsel %vm592_vm6, %v634_v19, -inf }
 0x399   : > { %641 = vmax.xlane.f32.xlu0 %v640_v26 }
 0x39a   : > { %v643_v28 = vsel %vm592_vm6, %v637_v24, -inf }
 0x39b   : > { %644 = vmax.xlane.f32.xlu1 %v643_v28 }
 0x3ac   : > { %659 = vrot.lane.b32.xlu1 %v2487_v37, %s2305_s10 }
 0x3b0   : > { %1036 = vrot.lane.b32.xlu1 %v2487_v37, %s2297_s19 }
 0x3f9   : > { %v846_v18 = vpop.f32.mrb[8].mxu1 }
 0x3fa   : > { %v847_v29 = vadd.f32 %v846_v18, %v2578_v16  ;;  %v1997_v30 = vpop.f32.mrb[9].mxu1 }
 0x3fb   : > { %v849_v31 = vpop.f32.mrb[10].mxu1 }
 0x3fc   : > { %v850_v34 = vadd.f32 %v849_v31, %v2578_v16  ;;  %v1998_v35 = vpop.f32.mrb[11].mxu1  ;;  %v853_v36 = vsel %vm592_vm6, %v847_v29, -inf }
 0x3fd   : > { %854 = vmax.xlane.f32.xlu0 %v853_v36 }
 0x3fe   : > { %v856_v38 = vsel %vm592_vm6, %v850_v34, -inf }
 0x401   : > { %857 = vmax.xlane.f32.xlu0 %v856_v38 }
 0x417   : > { %872 = vrot.lane.b32.xlu0 %v2487_v37, %s2306_s12 }
 0x426   : > { %v642_v41 = vpop.xlane.xlu0 %641 }
 0x427   : > { %v646_v42 = vsub.f32 %v634_v19, %v642_v41 }
 0x428   : > { %v645_v43 = vpop.xlane.xlu1 %644 }
 0x429   : > { %v648_v44 = vmul.f32 1.442695, %v646_v42  ;;  %v647_v46 = vsub.f32 %v637_v24, %v645_v43 }
 0x42b   : > { %2171 = vpow2.f32 %v648_v44  ;;  %v650_v48 = vmul.f32 1.442695, %v647_v46  ;;  %v1282_v46 = vmul.f32 %v1076_v9, %v2533_v0 }
 0x42c   : > { %v660_v49 = vpop.permute.xlu1 %659 }
 0x42d   : > { %2173 = vpow2.f32 %v650_v48  ;;  %v665_v53 = vsel %vm513_vm4, %v660_v49, 0 }
 0x42e   : > { %1988 = vmatpush3.bf16.msra.mxu0 %v665_v53 }
 0x42f   : > { %1999 = vmatprep.subr.bf16.mxu0 %v2288_v10 }
 0x430   : > { %v1037_v11 = vpop.permute.xlu1 %1036 }
 0x431   : > { %v1040_v14 = vsel %vm513_vm4, %v2492_v40, %v1037_v11 }
 0x432   : > { %v2616_v17 = vunpack.c.l.bf16 %v1040_v14  ;;  %v2631_v22 = vunpack.c.h.bf16 %v1040_v14 }
 0x434   : > { %v2622_v19 = vmul.f32 %v2616_v17, %v2509_v47  ;;  %v1243_v33 = vmul.f32 %v2616_v17, %v2515_v52  ;;  %v2637_v24 = vmul.f32 %v2616_v17, %v2458_v12  ;;  %v1230_v32 = vmul.f32 %v2631_v22, %v2509_v47 }
 0x435   : > { %v2172_v54 = vpop.eup %2171  ;;  %v1244_v45 = vmul.f32 %v2631_v22, %v2515_v52  ;;  %v1058_v9 = vmul.f32 %v2616_v17, %v2525_v58 }
 0x436   : > { %v652_v55 = vsel %vm592_vm6, %v2172_v54, 0.0 }
 0x437   : > { %v2174_v51 = vpop.eup %2173  ;;  %653 = vadd.xlane.f32.xlu0 %v652_v55  ;;  %v1059_v55 = vmul.f32 %v2631_v22, %v2525_v58 }
 0x438   : > { %v655_v37 = vsel %vm592_vm6, %v2174_v51, 0.0  ;;  %v658_v56 = vpack.c.bf16 %v2174_v51, %v2172_v54  ;;  %v2653_v54 = vmul.f32 %v2631_v22, %v2458_v12  ;;  %v2151_v51 = vld [vmem:[%s2416_s11 + $0x8] sm:$0xff]  }
 0x439   : > { %656 = vadd.xlane.f32.xlu1 %v655_v37  ;;  %2006 = vmatpush3.bf16.msra.mxu1 %v2151_v51 }
 0x43a   : > { %1990 = vmatmul.mubr.msk.bf16.vlgmr.msra.gmra.mrb[0].mxu0 %vm592_vm6, %v658_v56  ;;  %2011 = vmatprep.subr.bf16.mxu1 %v2288_v10 }
 0x43b   : > { %2001 = vmatprep.mubr.msk.bf16.mxu0 %vm2289_vm3, %v2288_v10 }
 0x48a   : > { %v855_v57 = vpop.xlane.xlu0 %854 }
 0x48b   : > { %v859_v59 = vsub.f32 %v847_v29, %v855_v57  ;;  %v1242_v57 = vmul.f32 %v2631_v22, %v2531_v63 }
 0x48d   : > { %v861_v60 = vmul.f32 1.442695, %v859_v59 }
 0x48e   : > { %v858_v61 = vpop.xlane.xlu0 %857 }
 0x48f   : > { %2175 = vpow2.f32 %v861_v60  ;;  %v860_v62 = vsub.f32 %v850_v34, %v858_v61 }
 0x491   : > { %v863_v50 = vmul.f32 1.442695, %v860_v62 }
 0x492   : > { %v873_v1 = vpop.permute.xlu0 %872 }
 0x493   : > { %2177 = vpow2.f32 %v863_v50  ;;  %v878_v3 = vsel %vm513_vm4, %v873_v1, 0 }
 0x494   : > { %2000 = vmatpush3.bf16.msra.mxu0 %v878_v3 }
 0x495   : > { %2017 = vmatprep.subr.bf16.mxu0 %v2288_v10 }
 0x499   : > { %v2176_v4 = vpop.eup %2175 }
 0x49a   : > { %v865_v5 = vsel %vm592_vm6, %v2176_v4, 0.0 }
 0x49b   : > { %866 = vadd.xlane.f32.xlu1 %v865_v5 }
 0x49d   : > { %v2178_v6 = vpop.eup %2177 }
 0x49e   : > { %v868_v7 = vsel %vm592_vm6, %v2178_v6, 0.0  ;;  %v871_v8 = vpack.c.bf16 %v2178_v6, %v2176_v4 }
 0x49f   : > { %869 = vadd.xlane.f32.xlu0 %v868_v7 }
 0x4a0   : > { %2002 = vmatmul.mubr.msk.bf16.vlgmr.msra.gmra.mrb[4].mxu0 %vm592_vm6, %v871_v8 }
 0x4a1   : > { %2019 = vmatprep.mubr.msk.bf16.mxu0 %vm2289_vm3, %v2288_v10 }
 0x4ac   : > { %1086 = vrot.lane.b32.xlu1 %v1084_v13, %s2299_s22 }
 0x4b0   : > { %1278 = vrot.lane.b32.xlu1 %v2614_v15, %s2294_s16 }
 0x4b4   : > { %1233 = vrot.lane.b32.xlu1 %v2622_v19, %s2294_s16 }
 0x4b5   : > { %1079 = vrot.lane.b32.xlu0 %v1077_v21, %s2294_s16 }
 0x4b8   : > { %1247 = vrot.lane.b32.xlu1 %v1243_v33, %s2299_s22 }
 0x4b9   : > { %1284 = vrot.lane.b32.xlu0 %v1083_v39, %s2299_s22 }
 0x4bc   : > { %1048 = vrot.lane.b32.xlu1 %v2637_v24, %s2294_s16 }
 0x4bd   : > { %1235 = vrot.lane.b32.xlu0 %v1230_v32, %s2294_s16 }
 0x4c1   : > { %1249 = vrot.lane.b32.xlu0 %v1244_v45, %s2299_s22 }
 0x4c4   : > { %v654_v25 = vpop.xlane.xlu0 %653 }
 0x4c5   : > { %2179 = vrcp.f32 %v654_v25 }
 0x4c6   : > { %v657_v26 = vpop.xlane.xlu1 %656 }
 0x4c7   : > { %2181 = vrcp.f32 %v657_v26 }
 0x4cf   : > { %v2180_v18 = vpop.eup %2179 }
 0x4d1   : > { %v2182_v30 = vpop.eup %2181 }
 0x50d   : > { %v701_v28 = vpop.f32.mrb[0].mxu0 }
 0x50e   : > { %v1991_v29 = vpop.f32.mrb[1].mxu0  ;;  %v709_v47 = vmul.f32 %v2180_v18, %v701_v28 }
 0x50f   : > { %v704_v31 = vpop.f32.mrb[2].mxu0  ;;  %v1057_v29 = vmul.f32 %v2631_v22, %v2555_v27 }
 0x510   : > { %v711_v34 = vmul.f32 %v2182_v30, %v704_v31  ;;  %v1992_v35 = vpop.f32.mrb[3].mxu0  ;;  %v2152_v30 = vld [vmem:[%s2416_s11] sm:$0xff]  }
 0x512   : > { %v2647_v36 = vpack.c.bf16 %v711_v34, %v709_v47 }
 0x514   : > { %v714_v0 = vrot.slane %v2647_v36, 4 }
 0x528   : > { %v867_v38 = vpop.xlane.xlu1 %866 }
 0x529   : > { %2183 = vrcp.f32 %v867_v38 }
 0x52c   : > { %v870_v41 = vpop.xlane.xlu0 %869  ;;  %v1087_v52 = vpop.permute.xlu1 %1086 }
 0x52d   : > { %v1089_v43 = vadd.f32 %v1087_v52, %v1083_v39  ;;  %2185 = vrcp.f32 %v870_v41  ;;  %v1241_v39 = vmul.f32 %v2616_v17, %v2531_v63  ;;  %v1056_v41 = vmul.f32 %v2616_v17, %v2555_v27 }
 0x530   : > { %v1080_v42 = vpop.permute.xlu0 %1079  ;;  %v1279_v8 = vpop.permute.xlu1 %1278 }
 0x531   : > { %v1082_v44 = vsub.f32 %v1077_v21, %v1080_v42  ;;  %v1281_v11 = vsub.f32 %v2614_v15, %v1279_v8 }
 0x533   : > { %v2139_v48 = vpack.i.bf16 %v1089_v43, %v1082_v44  ;;  %v2184_v61 = vpop.eup %2183 }
 0x534   : > { %v1285_v49 = vpop.permute.xlu0 %1284  ;;  %v1234_v13 = vpop.permute.xlu1 %1233 }
 0x535   : > { %v1287_v53 = vadd.f32 %v1285_v49, %v1282_v46  ;;  %2140 = vrot.lane.b32.xlu0 %v2139_v48, %s2301_s24  ;;  %v1239_v21 = vsub.f32 %v2622_v19, %v1234_v13 }
 0x537   : > { %v2186_v50 = vpop.eup %2185  ;;  %v2144_v14 = vpack.i.bf16 %v1287_v53, %v1281_v11 }
 0x538   : > { %v1236_v37 = vpop.permute.xlu0 %1235  ;;  %v1248_v33 = vpop.permute.xlu1 %1247 }
 0x539   : > { %1050 = vrot.lane.b32.xlu0 %v2653_v54, %s2294_s16  ;;  %v1240_v12 = vsub.f32 %v1230_v32, %v1236_v37  ;;  %v1253_v32 = vadd.f32 %v1248_v33, %v1241_v39 }
 0x53c   : > { %v1250_v56 = vpop.permute.xlu0 %1249  ;;  %v1049_v63 = vpop.permute.xlu1 %1048 }
 0x53d   : > { %1064 = vrot.lane.b32.xlu0 %v1059_v55, %s2299_s22  ;;  %v1254_v59 = vadd.f32 %v1250_v56, %v1242_v57  ;;  %v1054_v22 = vsub.f32 %v2637_v24, %v1049_v63 }
 0x541   : > { %715 = vrot.lane.b32.xlu0 %v714_v0, %s2307_s13 }
 0x545   : > { %1259 = vrot.lane.b32.xlu0 %v1240_v12, %s2303_s30 }
 0x549   : > { %1267 = vrot.lane.b32.xlu0 %v1254_v59, %s2303_s30 }
 0x573   : > { %v914_v60 = vpop.f32.mrb[4].mxu0 }
 0x574   : > { %v2003_v62 = vpop.f32.mrb[5].mxu0  ;;  %v922_v3 = vmul.f32 %v2184_v61, %v914_v60 }
 0x575   : > { %v917_v1 = vpop.f32.mrb[6].mxu0 }
 0x576   : > { %v924_v4 = vmul.f32 %v2186_v50, %v917_v1  ;;  %v2004_v5 = vpop.f32.mrb[7].mxu0 }
 0x578   : > { %v925_v6 = vpack.c.bf16 %v924_v4, %v922_v3 }
 0x57a   : > { %v927_v7 = vrot.slane %v925_v6, 4 }
 0x57c   : > { %928 = vrot.lane.b32.xlu1 %v927_v7, %s2307_s13 }
 0x580   : > { %1062 = vrot.lane.b32.xlu1 %v1058_v9, %s2299_s22 }
 0x584   : > { %2145 = vrot.lane.b32.xlu1 %v2144_v14, %s2302_s25 }
 0x588   : > { %1257 = vrot.lane.b32.xlu1 %v1239_v21, %s2303_s30 }
 0x58c   : > { %1265 = vrot.lane.b32.xlu1 %v1253_v32, %s2303_s30 }
 0x5a7   : > { %v2141_v58 = vpop.permute.xlu0 %2140 }
 0x5a8   : > { %v2143_v15 = vunpack.i.h.bf16 %v2141_v58  ;;  %v2142_v45 = vunpack.i.l.bf16 %v2141_v58 }
 0x5aa   : > { %v1098_v25 = vsel %vm553_vm5, %v2142_v45, %v2143_v15 }
 0x5ab   : > { %v1099_v26 = vpack.c.bf16 %v1098_v25, %v1098_v25  ;;  %v1051_v19 = vpop.permute.xlu0 %1050 }
 0x5ac   : > { %v1055_v38 = vsub.f32 %v2653_v54, %v1051_v19 }
 0x5ad   : > { %v1104_v28 = vsel %vm592_vm6, %v1099_v26, 0 }
 0x5ae   : > { %2018 = vmatpush3.bf16.xpose.msra.mxu0 %v1104_v28 }
 0x5af   : > { %2023 = vmatprep.subr.bf16.mxu0 %v2288_v10  ;;  %v1065_v18 = vpop.permute.xlu0 %1064 }
 0x5b0   : > { %v1069_v34 = vadd.f32 %v1065_v18, %v1057_v29 }
 0x5b2   : > { %v1071_v42 = vsel %vm553_vm5, %v1055_v38, %v1069_v34 }
 0x5b3   : > { %v716_v31 = vpop.permute.xlu0 %715  ;;  %v1073_v48 = vmul.f32 0.35355338, %v1071_v42 }
 0x5b4   : > { %v719_v24 = vsel %vm592_vm6, %v2647_v36, %v716_v31 }
 0x5b7   : > { %v1260_v44 = vpop.permute.xlu0 %1259 }
 0x5bb   : > { %v1268_v51 = vpop.permute.xlu0 %1267 }
 0x5bc   : > { %v1272_v56 = vsel %vm553_vm5, %v1260_v44, %v1268_v51 }
 0x5bd   : > { %v1274_v60 = vmul.f32 0.35355338, %v1272_v56 }
 0x5ee   : > { %v929_v47 = vpop.permute.xlu1 %928 }
 0x5ef   : > { %v932_v35 = vsel %vm592_vm6, %v925_v6, %v929_v47 }
 0x5f0   : > { %2008 = vmatmul.mubr.msk.bf16.vlgmr.msra.gmra.mrb[12].mxu1 %vm941_vm8, %v932_v35 }
 0x5f1   : > { %2012 = vmatpush3.bf16.msra.mxu1 %v2152_v30  ;;  %2013 = vmatprep.mubr.msk.bf16.mxu1 %vm2289_vm3, %v2288_v10 }
 0x5f2   : > { %v1063_v52 = vpop.permute.xlu1 %1062  ;;  %2029 = vmatprep.subr.bf16.mxu1 %v2288_v10 }
 0x5f3   : > { %v1068_v43 = vadd.f32 %v1063_v52, %v1056_v41 }
 0x5f5   : > { %v1070_v46 = vsel %vm553_vm5, %v1054_v22, %v1068_v43 }
 0x5f6   : > { %v1072_v49 = vmul.f32 0.35355338, %v1070_v46  ;;  %v2146_v53 = vpop.permute.xlu1 %2145 }
 0x5f7   : > { %v2148_v54 = vunpack.i.h.bf16 %v2146_v53  ;;  %v2147_v55 = vunpack.i.l.bf16 %v2146_v53 }
 0x5f8   : > { %v1074_v27 = vpack.c.bf16 %v1073_v48, %v1072_v49 }
 0x5f9   : > { %v1296_v17 = vsel %vm553_vm5, %v2147_v55, %v2148_v54 }
 0x5fa   : > { %v1258_v37 = vpop.permute.xlu1 %1257  ;;  %2020 = vmatmul.mubr.msk.bf16.vlgmr.msra.gmra.mrb[8].mxu0 %vm592_vm6, %v1074_v27  ;;  %v1297_v0 = vpack.c.bf16 %v1296_v17, %v1296_v17 }
 0x5fb   : > { %2025 = vmatprep.mubr.msk.bf16.mxu0 %vm2289_vm3, %v2288_v10 }
 0x5fc   : > { %2014 = vmatmul.mubr.msk.bf16.vlgmr.msra.gmra.mrb[12].mxu1 %vm941_vm8, %v719_v24  ;;  %v1302_v12 = vsel %vm592_vm6, %v1297_v0, 0  ;;  %v2153_v24 = vld [vmem:[%s2416_s11 + $0x8] sm:$0xff]  }
 0x5fd   : > { %2030 = vmatpush3.bf16.xpose.msra.mxu1 %v1302_v12  ;;  %2031 = vmatprep.mubr.msk.bf16.mxu1 %vm2289_vm3, %v2288_v10 }
 0x5fe   : > { %v1266_v57 = vpop.permute.xlu1 %1265  ;;  %2041 = vmatprep.subr.bf16.mxu1 %v2288_v10 }
 0x5ff   : > { %v1271_v59 = vsel %vm553_vm5, %v1258_v37, %v1266_v57 }
 0x600   : > { %v1273_v36 = vmul.f32 0.35355338, %v1271_v59 }
 0x602   : > { %v1275_v61 = vpack.c.bf16 %v1274_v60, %v1273_v36 }
 0x604   : > { %2032 = vmatmul.mubr.msk.bf16.vlgmr.msra.gmra.mrb[16].mxu1 %vm592_vm6, %v1275_v61 }
 0x605   : > { %2043 = vmatprep.mubr.msk.bf16.mxu1 %vm2289_vm3, %v2288_v10  ;;  %2042 = vmatpush3.bf16.msra.mxu1 %v2153_v24  ;;  %v2161_v24 = vld [vmem:[%s2435_s29] sm:$0xff]  }
 0x606   : > { %2047 = vmatprep.subr.bf16.mxu1 %v2288_v10 }
 0x6cd   : > { %v1140_v62 = vpop.f32.mrb[8].mxu0 }
 0x6ce   : > { %v1141_v50 = vadd.f32 %v1140_v62, %v2578_v16  ;;  %v2021_v1 = vpop.f32.mrb[9].mxu0 }
 0x6cf   : > { %v1026_v3 = vpop.f32.mrb[12].mxu1  ;;  %v1143_v4 = vpop.f32.mrb[10].mxu0 }
 0x6d0   : > { %v1032_v5 = vpack.c.bf16 %v1026_v3, %v1026_v3  ;;  %v1144_v6 = vadd.f32 %v1143_v4, %v2578_v16  ;;  %v2015_v7 = vpop.f32.mrb[13].mxu1  ;;  %v2022_v8 = vpop.f32.mrb[11].mxu0  ;;  %v1147_v9 = vsel %vm592_vm6, %v1141_v50, -inf }
 0x6d1   : > { %v1029_v11 = vpop.f32.mrb[14].mxu1  ;;  %1148 = vmax.xlane.f32.xlu1 %v1147_v9 }
 0x6d2   : > { %v1033_v13 = vadd.bf16 %v1032_v5, %v2439_v2  ;;  %v2016_v14 = vpop.f32.mrb[15].mxu1  ;;  %v1150_v21 = vsel %vm592_vm6, %v1144_v6, -inf }
 0x6d3   : > { %1151 = vmax.xlane.f32.xlu0 %v1150_v21  ;;  %v2154_v21 = vld [vmem:[%s2416_s11] sm:$0xff]  }
 0x6d4   : > { %1035 = vst.msk [vmem:[#allocation2] sm:$0xf] %vm1034_vm9, %v1033_v13 }
 0x6d7   : > { %v1338_v33 = vpop.f32.mrb[16].mxu1 }
 0x6d8   : > { %v1339_v39 = vadd.f32 %v1338_v33, %v2578_v16  ;;  %v2033_v32 = vpop.f32.mrb[17].mxu1 }
 0x6d9   : > { %v1341_v58 = vpop.f32.mrb[18].mxu1 }
 0x6da   : > { %v1342_v15 = vadd.f32 %v1341_v58, %v2578_v16  ;;  %v2034_v45 = vpop.f32.mrb[19].mxu1  ;;  %v1345_v25 = vsel %vm592_vm6, %v1339_v39, -inf }
 0x6db   : > { %1346 = vmax.xlane.f32.xlu0 %v1345_v25 }
 0x6dc   : > { %v1348_v26 = vsel %vm592_vm6, %v1342_v15, -inf }
 0x6dd   : > { %1349 = vmax.xlane.f32.xlu1 %v1348_v26 }
 0x6ee   : > { %1364 = vrot.lane.b32.xlu1 %v2492_v40, %s2306_s12 }
 0x6f1   : > { %1166 = vrot.lane.b32.xlu0 %v2492_v40, %s2305_s10 }
 0x75e   : > { %v1149_v28 = vpop.xlane.xlu1 %1148 }
 0x75f   : > { %v1153_v19 = vsub.f32 %v1141_v50, %v1149_v28 }
 0x760   : > { %v1152_v18 = vpop.xlane.xlu0 %1151 }
 0x761   : > { %v1155_v63 = vmul.f32 1.442695, %v1153_v19  ;;  %v1154_v29 = vsub.f32 %v1144_v6, %v1152_v18 }
 0x763   : > { %v1157_v30 = vmul.f32 1.442695, %v1154_v29  ;;  %2187 = vpow2.f32 %v1155_v63 }
 0x765   : > { %2189 = vpow2.f32 %v1157_v30 }
 0x768   : > { %v1347_v16 = vpop.xlane.xlu0 %1346 }
 0x769   : > { %v1351_v31 = vsub.f32 %v1339_v39, %v1347_v16 }
 0x76a   : > { %v1350_v47 = vpop.xlane.xlu1 %1349 }
 0x76b   : > { %v1353_v34 = vmul.f32 1.442695, %v1351_v31  ;;  %v1352_v35 = vsub.f32 %v1342_v15, %v1350_v47 }
 0x76c   : > { %v1167_v38 = vpop.permute.xlu0 %1166 }
 0x76d   : > { %2191 = vpow2.f32 %v1353_v34  ;;  %v1355_v41 = vmul.f32 1.442695, %v1352_v35  ;;  %v1172_v52 = vsel %vm513_vm4, %v1167_v38, 0  ;;  %v2188_v22 = vpop.eup %2187  ;;  %v2157_v35 = vld [vmem:[%s2421_s14 + $0x4] ss:$8 sps:$4 sm:$0xff]  }
 0x76e   : > { %2024 = vmatpush3.bf16.msra.mxu0 %v1172_v52  ;;  %v1365_v42 = vpop.permute.xlu1 %1364  ;;  %v1159_v27 = vsel %vm592_vm6, %v2188_v22, 0.0  ;;  %v2155_v38 = vld [vmem:[%s2421_s14] ss:$8 sps:$4 sm:$0xff]   ;;  %v2308_v52 = vmov 0  }
 0x76f   : > { %v2190_v40 = vpop.eup %2189  ;;  %2193 = vpow2.f32 %v1355_v41  ;;  %2035 = vmatprep.subr.bf16.mxu0 %v2288_v10  ;;  %v1370_v44 = vsel %vm513_vm4, %v1365_v42, 0  ;;  %v2158_v41 = vld [vmem:[%s2421_s14 + $0x10] ss:$8 sps:$4 sm:$0xff]  }
 0x770   : > { %v1165_v43 = vpack.c.bf16 %v2190_v40, %v2188_v22  ;;  %v1162_v55 = vsel %vm592_vm6, %v2190_v40, 0.0 }
 0x772   : > { %2026 = vmatmul.mubr.msk.bf16.vlgmr.msra.gmra.mrb[12].mxu0 %vm592_vm6, %v1165_v43 }
 0x773   : > { %2036 = vmatpush3.bf16.msra.mxu0 %v1370_v44  ;;  %2037 = vmatprep.mubr.msk.bf16.mxu0 %vm2289_vm3, %v2288_v10 }
 0x774   : > { %1585 = vmatprep.subr.bf16.mxu0 %v2157_v35 }
 0x777   : > { %v2192_v46 = vpop.eup %2191 }
 0x778   : > { %v1357_v48 = vsel %vm592_vm6, %v2192_v46, 0.0 }
 0x779   : > { %v2194_v49 = vpop.eup %2193  ;;  %1358 = vadd.xlane.f32.xlu1 %v1357_v48  ;;  %v1549_v48 = vld [vmem:[%s394_s21] sm:$0x1] }
 0x77a   : > { %v1360_v53 = vsel %vm592_vm6, %v2194_v49, 0.0  ;;  %v1363_v54 = vpack.c.bf16 %v2194_v49, %v2192_v46  ;;  %v1550_v49 = vunpack.c.l.bf16 %v1549_v48 }
 0x77b   : > { %1361 = vadd.xlane.f32.xlu0 %v1360_v53 }
 0x77c   : > { %2038 = vmatmul.mubr.msk.bf16.vlgmr.msra.gmra.mrb[16].mxu0 %vm592_vm6, %v1363_v54  ;;  %v1554_v53 = vrot.slane %v1550_v49, %v436_v23  ;;  %v2163_v23 = vld [vmem:[%s2435_s29 + $0x10] sm:$0xff]  }
 0x77d   : > { %1163 = vadd.xlane.f32.xlu1 %v1162_v55  ;;  %1586 = vmatpush1.bf16.msra.mxu0 %v2155_v38 }
 0x77e   : > { %1617 = vmatprep.mubr.bf16.mxu0 %v2308_v52 }
 0x77f   : > { %1160 = vadd.xlane.f32.xlu0 %v1159_v27 }
 0x806   : > { %v1359_v17 = vpop.xlane.xlu1 %1358 }
 0x808   : > { %v1362_v51 = vpop.xlane.xlu0 %1361 }
 0x80a   : > { %v1164_v37 = vpop.xlane.xlu1 %1163 }
 0x80b   : > { %2195 = vrcp.f32 %v1164_v37 }
 0x80c   : > { %v1161_v0 = vpop.xlane.xlu0 %1160 }
 0x80d   : > { %2197 = vrcp.f32 %v1161_v0 }
 0x80e   : > { %2199 = vrcp.f32 %v1359_v17 }
 0x80f   : > { %2201 = vrcp.f32 %v1362_v51 }
 0x815   : > { %v2196_v56 = vpop.eup %2195 }
 0x817   : > { %v2198_v59 = vpop.eup %2197 }
 0x818   : > { %v2200_v4 = vpop.eup %2199 }
 0x819   : > { %v2202_v6 = vpop.eup %2201 }
 0x845   : > { %v1208_v12 = vpop.f32.mrb[12].mxu0 }
 0x846   : > { %v2027_v57 = vpop.f32.mrb[13].mxu0  ;;  %v1216_v36 = vmul.f32 %v2198_v59, %v1208_v12  ;;  %v2164_v12 = vld [vmem:[%s2435_s29 + $0x18] sm:$0xff]  }
 0x847   : > { %v1211_v60 = vpop.f32.mrb[14].mxu0  ;;  %v2166_v57 = vld [vmem:[%s2435_s29 + $0x28] sm:$0xff]  }
 0x848   : > { %v1218_v61 = vmul.f32 %v2196_v56, %v1211_v60  ;;  %v2028_v62 = vpop.f32.mrb[15].mxu0  ;;  %v2165_v56 = vld [vmem:[%s2435_s29 + $0x20] sm:$0xff]  }
 0x84a   : > { %v1219_v50 = vpack.c.bf16 %v1218_v61, %v1216_v36 }
 0x84c   : > { %v1221_v1 = vrot.slane %v1219_v50, 4 }
 0x84e   : > { %1222 = vrot.lane.b32.xlu1 %v1221_v1, %s2307_s13 }
 0x84f   : > { %v1406_v3 = vpop.f32.mrb[16].mxu0 }
 0x850   : > { %v2039_v5 = vpop.f32.mrb[17].mxu0  ;;  %v1414_v8 = vmul.f32 %v2200_v4, %v1406_v3 }
 0x851   : > { %v1409_v7 = vpop.f32.mrb[18].mxu0 }
 0x852   : > { %v1416_v9 = vmul.f32 %v2202_v6, %v1409_v7  ;;  %v2040_v11 = vpop.f32.mrb[19].mxu0 }
 0x854   : > { %v1417_v13 = vpack.c.bf16 %v1416_v9, %v1414_v8 }
 0x856   : > { %v1419_v14 = vrot.slane %v1417_v13, 4 }
 0x858   : > { %1420 = vrot.lane.b32.xlu0 %v1419_v14, %s2307_s13 }
 0x8c0   : > { %v1223_v32 = vpop.permute.xlu1 %1222 }
 0x8c1   : > { %v1226_v58 = vsel %vm592_vm6, %v1219_v50, %v1223_v32 }
 0x8ca   : > { %v1421_v33 = vpop.permute.xlu0 %1420 }
 0x8cb   : > { %v1424_v39 = vsel %vm592_vm6, %v1417_v13, %v1421_v33 }
 0x8cc   : > { %2044 = vmatmul.mubr.msk.bf16.vlgmr.msra.gmra.mrb[20].mxu1 %vm941_vm8, %v1424_v39 }
 0x8cd   : > { %2048 = vmatpush3.bf16.msra.mxu1 %v2154_v21  ;;  %2049 = vmatprep.mubr.msk.bf16.mxu1 %vm2289_vm3, %v2288_v10 }
 0x8d8   : > { %2050 = vmatmul.mubr.msk.bf16.vlgmr.msra.gmra.mrb[20].mxu1 %vm941_vm8, %v1226_v58 }
 0x9ab   : > { %v1517_v15 = vpop.f32.mrb[20].mxu1 }
 0x9ac   : > { %v1523_v45 = vpack.c.bf16 %v1517_v15, %v1517_v15  ;;  %v2051_v25 = vpop.f32.mrb[21].mxu1 }
 0x9ad   : > { %v1520_v26 = vpop.f32.mrb[22].mxu1 }
 0x9ae   : > { %v1525_v28 = vrot.slane %v1523_v45, 4  ;;  %v2052_v19 = vpop.f32.mrb[23].mxu1 }
 0x9b0   : > { %v1527_v18 = vadd.bf16 %v1525_v28, %v2439_v2  ;;  %v2160_v2 = vld [vmem:[%s2421_s14 + $0x14] ss:$8 sps:$4 sm:$0xff]  }
 0x9b1   : > { %1587 = vmatprep.subr.bf16.mxu0 %v2160_v2 }
 0x9b2   : > { %1529 = vst.msk [vmem:[#allocation2] sm:$0xf0] %vm1528_vm10, %v1527_v18  ;;  %1588 = vmatpush1.bf16.msra.mxu0 %v2158_v41 }
 0x9b3   : > { %2053 = vmatprep.subr.bf16.mxu0 %v2288_v10 }
 0x9b9   : > { %v2749_v63 = vld [vmem:[#allocation2] sm:$0xff] }
 0x9ba   : > { %v1532_v29 = vunpack.c.h.bf16 %v2749_v63  ;;  %v1531_v30 = vunpack.c.l.bf16 %v2749_v63 }
 0x9bc   : > { %v1534_v16 = vmul.f32 %v1532_v29, %v1532_v29  ;;  %v1533_v31 = vmul.f32 %v1531_v30, %v1531_v30 }
 0x9be   : > { %v1538_v47 = vsel %vm416_vm2, %v1534_v16, 0.0  ;;  %v1535_v34 = vsel %vm416_vm2, %v1533_v31, 0.0 }
 0x9bf   : > { %1539 = vadd.xlane.f32.xlu0 %v1538_v47  ;;  %1536 = vadd.xlane.f32.xlu1 %v1535_v34 }
 0xa4c   : > { %v1540_v22 = vpop.xlane.xlu0 %1539  ;;  %v1537_v40 = vpop.xlane.xlu1 %1536 }
 0xa4d   : > { %v1542_v42 = vmul.f32 0.03125, %v1540_v22  ;;  %v1541_v43 = vmul.f32 0.03125, %v1537_v40 }
 0xa4f   : > { %v1544_v44 = vadd.f32 1e-06, %v1542_v42  ;;  %v1543_v46 = vadd.f32 1e-06, %v1541_v43 }
 0xa51   : > { %2203 = vrsqrt.f32 %v1544_v44 }
 0xa52   : > { %2205 = vrsqrt.f32 %v1543_v46 }
 0xa5b   : > { %v2204_v54 = vpop.eup %2203 }
 0xa5c   : > { %v2206_v55 = vpop.eup %2205  ;;  %v1548_v27 = vmul.f32 %v2204_v54, %v1532_v29 }
 0xa5d   : > { %v1547_v17 = vmul.f32 %v2206_v55, %v1531_v30 }
 0xa5e   : > { %v1556_v51 = vmul.f32 %v1554_v53, %v1548_v27 }
 0xa5f   : > { %v1555_v37 = vmul.f32 %v1554_v53, %v1547_v17 }
 0xa61   : > { %v1557_v0 = vpack.c.bf16 %v1556_v51, %v1555_v37 }
 0xa63   : > { %1920 = vmatmul.mubr.msk.bf16.vlgmr.msra.gmra.mrb[20].mxu0 %vm416_vm2, %v1557_v0 }
 0xa64   : > { %2065 = vmatprep.mubr.msk.bf16.mxu0 %vm2289_vm3, %v2288_v10  ;;  %2054 = vmatpush3.bf16.msra.mxu0 %v2161_v24 }
 0xa65   : > { %2055 = vmatprep.subr.bf16.mxu0 %v2288_v10 }
 0xa68   : > { %2056 = vmatpush3.bf16.msra.mxu0 %v2162_v20 }
 0xa69   : > { %2057 = vmatprep.subr.bf16.mxu0 %v2288_v10 }
 0xa6c   : > { %2058 = vmatpush3.bf16.msra.mxu0 %v2163_v23 }
 0xa6d   : > { %2059 = vmatprep.subr.bf16.mxu0 %v2288_v10 }
 0xa70   : > { %2060 = vmatpush3.bf16.msra.mxu0 %v2164_v12 }
 0xa71   : > { %2061 = vmatprep.subr.bf16.mxu0 %v2288_v10 }
 0xa74   : > { %2062 = vmatpush3.bf16.msra.mxu0 %v2165_v56 }
 0xa75   : > { %2063 = vmatprep.subr.bf16.mxu0 %v2288_v10 }
 0xa78   : > { %2064 = vmatpush3.bf16.msra.mxu0 %v2166_v57 }
 0xb36   : > { %v1619_v59 = vpop.f32.mrb[20].mxu0 }
 0xb37   : > { %1646 = vrot.lane.b32.xlu0 %v1619_v59, %s2290_s9  ;;  %v1621_v60 = vpop.f32.mrb[21].mxu0  ;;  %v1921_v62 = vmul.f32 -1.442695, %v1619_v59 }
 0xb38   : > { %1648 = vrot.lane.b32.xlu1 %v1621_v60, %s2290_s9  ;;  %v1623_v36 = vpop.f32.mrb[22].mxu0 }
 0xb39   : > { %v1625_v61 = vpop.f32.mrb[23].mxu0  ;;  %v1922_v50 = vmul.f32 -1.442695, %v1623_v36  ;;  %2207 = vpow2.f32 %v1921_v62 }
 0xb3b   : > { %1652 = vrot.lane.b32.xlu0 %v1625_v61, %s2290_s9  ;;  %2209 = vpow2.f32 %v1922_v50 }
 0xb3c   : > { %1650 = vrot.lane.b32.xlu1 %v1623_v36, %s2290_s9 }
 0xb43   : > { %v2208_v1 = vpop.eup %2207 }
 0xb44   : > { %v1634_v3 = vadd.f32 1.0, %v2208_v1 }
 0xb45   : > { %v2210_v10 = vpop.eup %2209 }
 0xb46   : > { %v1635_v4 = vadd.f32 1.0, %v2210_v10  ;;  %2211 = vrcp.f32 %v1634_v3 }
 0xb48   : > { %2213 = vrcp.f32 %v1635_v4 }
 0xb50   : > { %v2212_v6 = vpop.eup %2211 }
 0xb51   : > { %v1640_v13 = vmul.f32 %v2212_v6, %v1619_v59 }
 0xb52   : > { %v2214_v8 = vpop.eup %2213 }
 0xb53   : > { %v1641_v14 = vmul.f32 %v2214_v8, %v1623_v36 }
 0xba9   : > { %v1647_v5 = vpop.permute.xlu0 %1646 }
 0xbaa   : > { %v1649_v7 = vpop.permute.xlu1 %1648 }
 0xbab   : > { %v1654_v9 = vsel %vm416_vm2, %v1647_v5, %v1649_v7 }
 0xbac   : > { %v1658_v39 = vmul.f32 %v1654_v9, %v1640_v13 }
 0xbad   : > { %v1653_v11 = vpop.permute.xlu0 %1652 }
 0xbae   : > { %v1651_v21 = vpop.permute.xlu1 %1650 }
 0xbaf   : > { %v1655_v33 = vsel %vm416_vm2, %v1651_v21, %v1653_v11 }
 0xbb0   : > { %v1659_v32 = vmul.f32 %v1655_v33, %v1641_v14 }
 0xbb2   : > { %v1660_v58 = vpack.c.bf16 %v1659_v32, %v1658_v39 }
 0xbb4   : > { %2066 = vmatmul.mubr.msk.bf16.vlgmr.msra.gmra.mrb[24].mxu0 %vm1709_vm11, %v1660_v58 }
 0xc87   : > { %v1747_v15 = vpop.f32.mrb[24].mxu0 }
 0xc88   : > { %v2067_v45 = vpop.f32.mrb[25].mxu0  ;;  %1760 = sbr.rel (%p1930_p4) target bundleno = 3217 (0xc91), region = 64 }
 0xc89   : > { %v1750_v25 = vpop.f32.mrb[26].mxu0 }
 0xc8a   : > { %v1754_v26 = vpack.c.bf16 %v1750_v25, %v1747_v15  ;;  %v2068_v28 = vpop.f32.mrb[27].mxu0 }
 0xc8c   : > { %v1755_v19 = vadd.bf16 %v1754_v26, %v2749_v63 }
 0xc8e   : > { %1756 = vst.msk [vmem:[#allocation2] sm:$0xff] %vm416_vm2, %v1755_v19  ;;  %v1931_v18 = vcombine.high (!%p1930_p4), %v1755_v19, %v1755_v19 }
 0xc8f   : > { %1761 = vst.msk [vmem:[#allocation6] sm:$0xf] %vm1034_vm9, %v1755_v19 }
 0xc90   : > { %1767 = vst.msk [vmem:[#allocation6 + $0x4] sm:$0xf] %vm1034_vm9, %v1931_v18 }
 0xc91 PF: > { %p2092_p6 = scmp.eq.s32.totalorder %s2362_s28, 1  ;;  %s2309_s23 = smov [#allocation6]  }
 0xc92   : > { %s1774_s14 = sshll.u32 %s2309_s23, 4  ;;  %s1775_s14 = int_to_ptr.vmem [resolvable:$true] %s1774_s14 }
 0xc93   : > { %s2243_s21 = scalar_lea.vmem %s1775_s14, 128  ;;  %p2250_p13 = scmp.lt.s32.totalorder %s1775_s14, %s1775_s14 }
 0xc94   : > { %p2244_p10 = scmp.ne.s32.totalorder %s1775_s14, %s2243_s21  ;;  %p2251_p0 = scmp.lt.s32.totalorder %s2243_s21, %s2243_s21 }
 0xc96   : > { %p2245_p11 = pnand %p2244_p10, %p2092_p6  ;;  %p2252_p1 = por %p2251_p0, %p2250_p13 }
 0xc98   : > { %p2246_p12 = pneg %p2245_p11 }
 0xc9a   : > { %p2253_p5 = pnand %p2252_p1, %p2246_p12 }
 0xc9c   : > { %2256 = shalt.err (!%p2253_p5)
}
 0xc9d   : > { %s2257_s16 = scalar_lea.hbm %s2827_s8, 128 }
 0xc9e   : > { %p2258_p7 = scmp.ne.s32.totalorder %s2827_s8, %s2257_s16  ;;  %p2263_p2 = scmp.lt.u32.totalorder %s2257_s16, %s2827_s8 }
 0xca0   : > { %p2259_p9 = pnand %p2258_p7, %p2092_p6 }
 0xca2   : > { %p2260_p8 = pneg %p2259_p9 }
 0xca4   : > { %p2265_p3 = pnand %p2263_p2, %p2260_p8 }
 0xca6   : > { %2268 = shalt.err (!%p2265_p3)
}
 0xca7   : > { %s2310_s26 = smov 64  }
 0xca8   : > { %2083 = dma.vmem_to_hbm [thread:$0]  (%p2092_p6), %s1775_s14, 128, %s2827_s8, [#allocation5], %s2310_s26, %s2310_s26, %s2299_s22  }
 0xca9   : > { %2278 = dma.done.wait (%p2092_p6), [#allocation5], 128  }
 0xcaa   : > { %2280 = vsyncadd (%p2092_p6), [#allocation5], 4294967168 }
 0xcab PF: > { %s20_s27 = sadd.s32 1, %s2283_s27  }
 0xcac   : > { %p17_p4 = scmp.ge.s32.totalorder %s20_s27, 4  }
 0xcae   :  { %19 = sbr.rel (!%p17_p4) target bundleno = 2 (0x2), region = 109 }
 0xcb5   :  { %1790 = vsyncpa [#allocation4], 1 }
 0xcb6   :  { %1792 = vsyncpa [#allocation4 + $0x1], 1 }
 0xcb7   :  { %1793 = vsyncpa [#allocation5], 1 }
 0xcb8   :  { %1795 = vsyncpa [#allocation5 + $0x1], 1 }

</bundles_post_ra>
